<compile_context>
chip_gen: v6e
topology: v6e:2x2x1
jax: 0.10.0
libtpu: 0.0.40
codegen_flags: <defaults>
</compile_context>

<pallas_src>
import functools

import numpy as np
import jax
import jax.numpy as jnp
from jax import lax
from jax.experimental import pallas as pl
from jax.experimental.pallas import tpu as pltpu

LANE = 128


# ---------------------------------------------------------------------------
# kernel bodies
# ---------------------------------------------------------------------------
def _finalize(acc_ref, o_ref, activation, valid_cols):
    """Fused epilogue: activation applied while the tile is still in VMEM."""
    acc = acc_ref[...]
    if activation == "relu":
        out = jnp.maximum(acc, 0.0)
    elif activation == "softmax":
        valid = acc.shape[-1] if valid_cols is None else valid_cols
        col = lax.broadcasted_iota(jnp.int32, acc.shape, dimension=1)
        masked = jnp.where(col < valid, acc, -1e30)      # mask padded lanes
        m = jnp.max(masked, axis=-1, keepdims=True)
        e = jnp.exp(masked - m)
        s = jnp.sum(e, axis=-1, keepdims=True)
        out = e * pl.reciprocal(s, approx=True)
    else:
        out = acc
    o_ref[...] = out.astype(o_ref.dtype)


def _rgcn_input_kernel(nz_ref, a_ref, w_ref, o_ref, acc_ref, *,
                       activation, valid_cols, mb, kb):
    # grid = (dst block i, src block k, relation r); k and r are reductions.
    i = pl.program_id(0)
    k = pl.program_id(1)
    r = pl.program_id(2)

    @pl.when((k == 0) & (r == 0))
    def _init():
        acc_ref[...] = jnp.zeros_like(acc_ref)

    # skip all-zero A_r tiles (block sparsity)
    @pl.when(nz_ref[(r * mb + i) * kb + k] > 0)
    def _compute():
        acc_ref[...] += jnp.dot(a_ref[...], w_ref[...],
                                preferred_element_type=jnp.float32)

    @pl.when((k == pl.num_programs(1) - 1) & (r == pl.num_programs(2) - 1))
    def _fin():
        _finalize(acc_ref, o_ref, activation, valid_cols)


def _rgcn_hidden_kernel(nz_ref, a_ref, h_ref, w_ref, o_ref, acc_ref, *,
                        activation, valid_cols, mb, kb):
    i = pl.program_id(0)
    k = pl.program_id(1)
    r = pl.program_id(2)

    @pl.when((k == 0) & (r == 0))
    def _init():
        acc_ref[...] = jnp.zeros_like(acc_ref)

    @pl.when(nz_ref[(r * mb + i) * kb + k] > 0)
    def _compute():
        # Fused: T = H_k @ W_r never leaves VMEM, then acc += A_r[i, k] @ T.
        t = jnp.dot(h_ref[...], w_ref[...],
                    preferred_element_type=jnp.float32)
        acc_ref[...] += jnp.dot(a_ref[...], t.astype(a_ref.dtype),
                                preferred_element_type=jnp.float32)

    @pl.when((k == pl.num_programs(1) - 1) & (r == pl.num_programs(2) - 1))
    def _fin():
        _finalize(acc_ref, o_ref, activation, valid_cols)


# ---------------------------------------------------------------------------
# pallas_call wrappers
# ---------------------------------------------------------------------------
def rgcn_input_layer(nz_mask, a, w, *, activation="relu", valid_cols=None,
                     out_dtype=jnp.float32, tm=128, tk=128):
    """act( sum_r A_r @ W_r )  — input layer (node feature = one-hot id)."""
    num_rels, n_pad, _ = a.shape
    f_out = w.shape[-1]
    assert n_pad % tm == 0 and n_pad % tk == 0
    mb, kb = n_pad // tm, n_pad // tk
    kernel = functools.partial(_rgcn_input_kernel, activation=activation,
                               valid_cols=valid_cols, mb=mb, kb=kb)
    return pl.pallas_call(
        kernel,
        out_shape=jax.ShapeDtypeStruct((n_pad, f_out), out_dtype),
        grid_spec=pltpu.PrefetchScalarGridSpec(
            num_scalar_prefetch=1,
            grid=(mb, kb, num_rels),
            in_specs=[
                pl.BlockSpec((None, tm, tk), lambda i, k, r, nz: (r, i, k)),
                pl.BlockSpec((None, tk, f_out), lambda i, k, r, nz: (r, k, 0)),
            ],
            out_specs=pl.BlockSpec((tm, f_out), lambda i, k, r, nz: (i, 0)),
            scratch_shapes=[pltpu.VMEM((tm, f_out), jnp.float32)],
        ),
        compiler_params=pltpu.CompilerParams(
            dimension_semantics=("parallel", "arbitrary", "arbitrary")),
    )(nz_mask, a, w)


def rgcn_hidden_layer(nz_mask, a, h, w, *, activation="relu", valid_cols=None,
                      out_dtype=jnp.float32, tm=128, tk=128):
    """act( sum_r A_r @ (H @ W_r) )  — hidden / output layer, fully fused."""
    num_rels, n_pad, _ = a.shape
    f_in = h.shape[-1]
    f_out = w.shape[-1]
    assert w.shape == (num_rels, f_in, f_out)
    assert n_pad % tm == 0 and n_pad % tk == 0
    mb, kb = n_pad // tm, n_pad // tk
    kernel = functools.partial(_rgcn_hidden_kernel, activation=activation,
                               valid_cols=valid_cols, mb=mb, kb=kb)
    return pl.pallas_call(
        kernel,
        out_shape=jax.ShapeDtypeStruct((n_pad, f_out), out_dtype),
        grid_spec=pltpu.PrefetchScalarGridSpec(
            num_scalar_prefetch=1,
            grid=(mb, kb, num_rels),
            in_specs=[
                pl.BlockSpec((None, tm, tk), lambda i, k, r, nz: (r, i, k)),     # A_r tile
                pl.BlockSpec((tk, f_in), lambda i, k, r, nz: (k, 0)),            # H tile
                pl.BlockSpec((None, f_in, f_out), lambda i, k, r, nz: (r, 0, 0)),  # W_r
            ],
            out_specs=pl.BlockSpec((tm, f_out), lambda i, k, r, nz: (i, 0)),
            scratch_shapes=[pltpu.VMEM((tm, f_out), jnp.float32)],
        ),
        compiler_params=pltpu.CompilerParams(
            dimension_semantics=("parallel", "arbitrary", "arbitrary")),
    )(nz_mask, a, h, w)


def rgcn_forward(nz_mask, a, w_in, w_hid, w_out, *, num_nodes, out_dim,
                 tm=128, tk=128):
    # input layer (one-hot node ids): feed W_r directly, no identity-H matmul
    h = rgcn_input_layer(nz_mask, a, w_in, activation="relu",
                         out_dtype=jnp.bfloat16, tm=tm, tk=tk)
    # hidden layer
    h = rgcn_hidden_layer(nz_mask, a, h, w_hid, activation="relu",
                          out_dtype=jnp.bfloat16, tm=tm, tk=tk)
    # output layer: softmax over the out_dim valid (unpadded) classes
    h = rgcn_hidden_layer(nz_mask, a, h, w_out, activation="softmax",
                          valid_cols=out_dim, out_dtype=jnp.float32,
                          tm=tm, tk=tk)
    return h[:num_nodes, :out_dim]


# ---------------------------------------------------------------------------
# host-side helpers
# ---------------------------------------------------------------------------
def block_nonzero_mask(a_dense, tm, tk):
    """Flat int32 mask [R*mb*kb]: 1 where the (r, i, k) tile of A has any edge."""
    num_rels, n_pad, _ = a_dense.shape
    mb, kb = n_pad // tm, n_pad // tk
    blocks = a_dense.reshape(num_rels, mb, tm, kb, tk)
    nz = np.abs(blocks).sum(axis=(2, 4)) > 0
    return np.asarray(nz.reshape(-1), np.int32)


# ---------------------------------------------------------------------------
# demo / self-test
# ---------------------------------------------------------------------------
if __name__ == "__main__":
    NUM_NODES = 128          # == in_feat of the input layer (one-hot ids)
    NUM_RELS = 4
    H_DIM = 16               # default R-GCN hidden size
    OUT_DIM = 8              # number of classes
    NUM_EDGES = 512
    TM = TK = 128            # use 256 on v6e for large graphs

    key = jax.random.PRNGKey(0)
    ks = jax.random.split(key, 7)
    src = np.asarray(jax.random.randint(ks[0], (NUM_EDGES,), 0, NUM_NODES))
    dst = np.asarray(jax.random.randint(ks[1], (NUM_EDGES,), 0, NUM_NODES))
    rel = np.asarray(jax.random.randint(ks[2], (NUM_EDGES,), 0, NUM_RELS))
    norm = np.asarray(jax.random.uniform(ks[3], (NUM_EDGES,),
                                         minval=0.1, maxval=1.0),
                      dtype=np.float32)

    # densify:  A[r, dst, src] += norm   (duplicate edges summed)
    a_dense = np.zeros((NUM_RELS, NUM_NODES, NUM_NODES), np.float32)
    np.add.at(a_dense, (rel, dst, src), norm)

    # xavier-uniform weights with gain('relu') = sqrt(2)
    def xavier(k, shape):
        fan_in, fan_out = shape[-2], shape[-1]
        lim = float(np.sqrt(2.0) * np.sqrt(6.0 / (fan_in + fan_out)))
        return jax.random.uniform(k, shape, jnp.float32, -lim, lim)

    w_in = xavier(ks[4], (NUM_RELS, NUM_NODES, H_DIM))
    w_hid = xavier(ks[5], (NUM_RELS, H_DIM, H_DIM))
    w_out = xavier(ks[6], (NUM_RELS, H_DIM, OUT_DIM))

    # pad feature dims to 128 lanes (lane-dense stores / full MXU width) and
    # cast the bulky operands to bf16; accumulation stays f32 in-kernel.
    def pad_rc(x, rows, cols):
        return jnp.pad(x, ((0, 0), (0, rows - x.shape[1]),
                           (0, cols - x.shape[2])))

    w_in_p = pad_rc(w_in, NUM_NODES, LANE).astype(jnp.bfloat16)
    w_hid_p = pad_rc(w_hid, LANE, LANE).astype(jnp.bfloat16)
    w_out_p = pad_rc(w_out, LANE, LANE).astype(jnp.bfloat16)
    a_bf16 = jnp.asarray(a_dense).astype(jnp.bfloat16)
    nz_mask = jnp.asarray(block_nonzero_mask(a_dense, TM, TK))

    fwd = jax.jit(functools.partial(rgcn_forward, num_nodes=NUM_NODES,
                                    out_dim=OUT_DIM, tm=TM, tk=TK))
    out = jax.block_until_ready(fwd(nz_mask, a_bf16, w_in_p, w_hid_p, w_out_p))

    # pure-JAX reference (same bf16-rounded inputs, f32 math)
    a32 = jnp.asarray(a_bf16, jnp.float32)
    wi32 = jnp.asarray(w_in.astype(jnp.bfloat16), jnp.float32)
    wh32 = jnp.asarray(w_hid.astype(jnp.bfloat16), jnp.float32)
    wo32 = jnp.asarray(w_out.astype(jnp.bfloat16), jnp.float32)
    h0 = jax.nn.relu(jnp.einsum("rds,rsf->df", a32, wi32))
    h1 = jax.nn.relu(jnp.einsum("rds,sf,rfg->dg", a32, h0, wh32))
    logits = jnp.einsum("rds,sf,rfg->dg", a32, h1, wo32)
    ref = jax.nn.softmax(logits, axis=1)

    np.testing.assert_allclose(np.asarray(out), np.asarray(ref),
                               rtol=5e-2, atol=5e-2)
    print("KERNEL_OK")
</pallas_src>

<mosaic_0001>
module attributes {stable_mosaic.version = 11 : i64} {
  func.func @_rgcn_input_kernel(%arg0: i32, %arg1: i32, %arg2: i32, %arg3: memref<4xi32, #tpu.memory_space<smem>>, %arg4: memref<1x128x128xbf16, #tpu.memory_space<vmem>>, %arg5: memref<1x128x128xbf16, #tpu.memory_space<vmem>>, %arg6: memref<128x128xbf16, #tpu.memory_space<vmem>>, %arg7: memref<128x128xf32, #tpu.memory_space<vmem>>) attributes {dimension_semantics = [#tpu.dimension_semantics<parallel>, #tpu.dimension_semantics<arbitrary>, #tpu.dimension_semantics<arbitrary>], iteration_bounds = array<i64: 1, 1, 4>, scalar_prefetch = 1 : i64, scratch_operands = 1 : i64, tpu.core_type = #tpu.core_type<tc>, window_params = [{transform_indices = @transform_0, window_bounds = array<i64: 1, 128, 128>}, {transform_indices = @transform_1, window_bounds = array<i64: 1, 128, 128>}, {transform_indices = @transform_2, window_bounds = array<i64: 128, 128>}]} {
    %c0_i32 = arith.constant 0 : i32
    %0 = arith.cmpi eq, %arg1, %c0_i32 : i32
    %c0_i32_0 = arith.constant 0 : i32
    %1 = arith.cmpi eq, %arg2, %c0_i32_0 : i32
    %2 = arith.andi %0, %1 : i1
    %3 = arith.extui %2 : i1 to i32
    %c0_i32_1 = arith.constant 0 : i32
    %4 = arith.cmpi ne, %3, %c0_i32_1 : i32
    scf.if %4 {
      %cst = arith.constant 0.000000e+00 : f32
      %19 = vector.broadcast %cst : f32 to vector<128x128xf32>
      %c0 = arith.constant 0 : index
      %c0_7 = arith.constant 0 : index
      %20 = vector.load %arg7[%c0, %c0_7] : memref<128x128xf32, #tpu.memory_space<vmem>>, vector<128x128xf32>
      tpu.vector_store %arg7[%c0, %c0_7], %19 {strides = array<i32>} : memref<128x128xf32, #tpu.memory_space<vmem>>, vector<128x128xf32>,
    } else {
    }
    %c1_i32 = arith.constant 1 : i32
    %5 = arith.muli %arg2, %c1_i32 : i32
    %6 = arith.addi %5, %arg0 : i32
    %c1_i32_2 = arith.constant 1 : i32
    %7 = arith.muli %6, %c1_i32_2 : i32
    %8 = arith.addi %7, %arg1 : i32
    %9 = arith.index_cast %8 : i32 to index
    %10 = memref.load %arg3[%9] : memref<4xi32, #tpu.memory_space<smem>>
    %c0_i32_3 = arith.constant 0 : i32
    %11 = arith.cmpi sgt, %10, %c0_i32_3 : i32
    %12 = arith.extui %11 : i1 to i32
    %c0_i32_4 = arith.constant 0 : i32
    %13 = arith.cmpi ne, %12, %c0_i32_4 : i32
    scf.if %13 {
      %c0 = arith.constant 0 : index
      %c0_7 = arith.constant 0 : index
      %19 = vector.load %arg7[%c0, %c0_7] : memref<128x128xf32, #tpu.memory_space<vmem>>, vector<128x128xf32>
      %c0_8 = arith.constant 0 : index
      %c0_9 = arith.constant 0 : index
      %c0_10 = arith.constant 0 : index
      %20 = vector.load %arg4[%c0_8, %c0_9, %c0_10] : memref<1x128x128xbf16, #tpu.memory_space<vmem>>, vector<1x128x128xbf16>
      %21 = vector.shape_cast %20 : vector<1x128x128xbf16> to vector<128x128xbf16>
      %c0_11 = arith.constant 0 : index
      %c0_12 = arith.constant 0 : index
      %c0_13 = arith.constant 0 : index
      %22 = vector.load %arg5[%c0_11, %c0_12, %c0_13] : memref<1x128x128xbf16, #tpu.memory_space<vmem>>, vector<1x128x128xbf16>
      %23 = vector.shape_cast %22 : vector<1x128x128xbf16> to vector<128x128xbf16>
      %cst = arith.constant dense<0.000000e+00> : vector<128x128xf32>
      %24 = tpu.matmul %21, %23, %cst {dimension_numbers = #tpu.dot_dimension_numbers<[1], [0], [0], [1], [0, 0, 1, 1], [], []>} : vector<128x128xbf16>, vector<128x128xbf16>, vector<128x128xf32> -> vector<128x128xf32>
      %25 = arith.addf %19, %24 : vector<128x128xf32>
      %c0_14 = arith.constant 0 : index
      %c0_15 = arith.constant 0 : index
      %26 = vector.load %arg7[%c0_14, %c0_15] : memref<128x128xf32, #tpu.memory_space<vmem>>, vector<128x128xf32>
      tpu.vector_store %arg7[%c0_14, %c0_15], %25 {strides = array<i32>} : memref<128x128xf32, #tpu.memory_space<vmem>>, vector<128x128xf32>,
    } else {
    }
    %c0_i32_5 = arith.constant 0 : i32
    %14 = arith.cmpi eq, %arg1, %c0_i32_5 : i32
    %c3_i32 = arith.constant 3 : i32
    %15 = arith.cmpi eq, %arg2, %c3_i32 : i32
    %16 = arith.andi %14, %15 : i1
    %17 = arith.extui %16 : i1 to i32
    %c0_i32_6 = arith.constant 0 : i32
    %18 = arith.cmpi ne, %17, %c0_i32_6 : i32
    scf.if %18 {
      %c0 = arith.constant 0 : index
      %c0_7 = arith.constant 0 : index
      %19 = vector.load %arg7[%c0, %c0_7] : memref<128x128xf32, #tpu.memory_space<vmem>>, vector<128x128xf32>
      %cst = arith.constant 0.000000e+00 : f32
      %20 = vector.broadcast %cst : f32 to vector<128x128xf32>
      %21 = arith.maximumf %19, %20 : vector<128x128xf32>
      %22 = arith.truncf %21 : vector<128x128xf32> to vector<128x128xbf16>
      %c0_8 = arith.constant 0 : index
      %c0_9 = arith.constant 0 : index
      %23 = vector.load %arg6[%c0_8, %c0_9] : memref<128x128xbf16, #tpu.memory_space<vmem>>, vector<128x128xbf16>
      tpu.vector_store %arg6[%c0_8, %c0_9], %22 {strides = array<i32>} : memref<128x128xbf16, #tpu.memory_space<vmem>>, vector<128x128xbf16>,
    } else {
    }
    return
  }
  func.func @transform_0(%arg0: i32, %arg1: i32, %arg2: i32, %arg3: memref<4xi32, #tpu.memory_space<smem>>) -> (i32, i32, i32) {
    %c0_i32 = arith.constant 0 : i32
    return %arg2, %arg0, %arg1 : i32, i32, i32
  }
  func.func @transform_1(%arg0: i32, %arg1: i32, %arg2: i32, %arg3: memref<4xi32, #tpu.memory_space<smem>>) -> (i32, i32, i32) {
    %c0_i32 = arith.constant 0 : i32
    %c0_i32_0 = arith.constant 0 : i32
    return %arg2, %arg1, %c0_i32 : i32, i32, i32
  }
  func.func @transform_2(%arg0: i32, %arg1: i32, %arg2: i32, %arg3: memref<4xi32, #tpu.memory_space<smem>>) -> (i32, i32) {
    %c0_i32 = arith.constant 0 : i32
    %c0_i32_0 = arith.constant 0 : i32
    return %arg0, %c0_i32 : i32, i32
  }
}

module attributes {stable_mosaic.version = 11 : i64} {
  func.func @_rgcn_hidden_kernel(%arg0: i32, %arg1: i32, %arg2: i32, %arg3: memref<4xi32, #tpu.memory_space<smem>>, %arg4: memref<1x128x128xbf16, #tpu.memory_space<vmem>>, %arg5: memref<128x128xbf16, #tpu.memory_space<vmem>>, %arg6: memref<1x128x128xbf16, #tpu.memory_space<vmem>>, %arg7: memref<128x128xf32, #tpu.memory_space<vmem>>, %arg8: memref<128x128xf32, #tpu.memory_space<vmem>>) attributes {dimension_semantics = [#tpu.dimension_semantics<parallel>, #tpu.dimension_semantics<arbitrary>, #tpu.dimension_semantics<arbitrary>], iteration_bounds = array<i64: 1, 1, 4>, scalar_prefetch = 1 : i64, scratch_operands = 1 : i64, tpu.core_type = #tpu.core_type<tc>, window_params = [{transform_indices = @transform_0, window_bounds = array<i64: 1, 128, 128>}, {transform_indices = @transform_1, window_bounds = array<i64: 128, 128>}, {transform_indices = @transform_2, window_bounds = array<i64: 1, 128, 128>}, {transform_indices = @transform_3, window_bounds = array<i64: 128, 128>}]} {
    %c0_i32 = arith.constant 0 : i32
    %0 = arith.cmpi eq, %arg1, %c0_i32 : i32
    %c0_i32_0 = arith.constant 0 : i32
    %1 = arith.cmpi eq, %arg2, %c0_i32_0 : i32
    %2 = arith.andi %0, %1 : i1
    %3 = arith.extui %2 : i1 to i32
    %c0_i32_1 = arith.constant 0 : i32
    %4 = arith.cmpi ne, %3, %c0_i32_1 : i32
    scf.if %4 {
      %cst = arith.constant 0.000000e+00 : f32
      %19 = vector.broadcast %cst : f32 to vector<128x128xf32>
      %c0 = arith.constant 0 : index
      %c0_7 = arith.constant 0 : index
      %20 = vector.load %arg8[%c0, %c0_7] : memref<128x128xf32, #tpu.memory_space<vmem>>, vector<128x128xf32>
      tpu.vector_store %arg8[%c0, %c0_7], %19 {strides = array<i32>} : memref<128x128xf32, #tpu.memory_space<vmem>>, vector<128x128xf32>,
    } else {
    }
    %c1_i32 = arith.constant 1 : i32
    %5 = arith.muli %arg2, %c1_i32 : i32
    %6 = arith.addi %5, %arg0 : i32
    %c1_i32_2 = arith.constant 1 : i32
    %7 = arith.muli %6, %c1_i32_2 : i32
    %8 = arith.addi %7, %arg1 : i32
    %9 = arith.index_cast %8 : i32 to index
    %10 = memref.load %arg3[%9] : memref<4xi32, #tpu.memory_space<smem>>
    %c0_i32_3 = arith.constant 0 : i32
    %11 = arith.cmpi sgt, %10, %c0_i32_3 : i32
    %12 = arith.extui %11 : i1 to i32
    %c0_i32_4 = arith.constant 0 : i32
    %13 = arith.cmpi ne, %12, %c0_i32_4 : i32
    scf.if %13 {
      %c0 = arith.constant 0 : index
      %c0_7 = arith.constant 0 : index
      %19 = vector.load %arg5[%c0, %c0_7] : memref<128x128xbf16, #tpu.memory_space<vmem>>, vector<128x128xbf16>
      %c0_8 = arith.constant 0 : index
      %c0_9 = arith.constant 0 : index
      %c0_10 = arith.constant 0 : index
      %20 = vector.load %arg6[%c0_8, %c0_9, %c0_10] : memref<1x128x128xbf16, #tpu.memory_space<vmem>>, vector<1x128x128xbf16>
      %21 = vector.shape_cast %20 : vector<1x128x128xbf16> to vector<128x128xbf16>
      %cst = arith.constant dense<0.000000e+00> : vector<128x128xf32>
      %22 = tpu.matmul %19, %21, %cst {dimension_numbers = #tpu.dot_dimension_numbers<[1], [0], [0], [1], [0, 0, 1, 1], [], []>} : vector<128x128xbf16>, vector<128x128xbf16>, vector<128x128xf32> -> vector<128x128xf32>
      %c0_11 = arith.constant 0 : index
      %c0_12 = arith.constant 0 : index
      %23 = vector.load %arg8[%c0_11, %c0_12] : memref<128x128xf32, #tpu.memory_space<vmem>>, vector<128x128xf32>
      %c0_13 = arith.constant 0 : index
      %c0_14 = arith.constant 0 : index
      %c0_15 = arith.constant 0 : index
      %24 = vector.load %arg4[%c0_13, %c0_14, %c0_15] : memref<1x128x128xbf16, #tpu.memory_space<vmem>>, vector<1x128x128xbf16>
      %25 = vector.shape_cast %24 : vector<1x128x128xbf16> to vector<128x128xbf16>
      %26 = arith.truncf %22 : vector<128x128xf32> to vector<128x128xbf16>
      %cst_16 = arith.constant dense<0.000000e+00> : vector<128x128xf32>
      %27 = tpu.matmul %25, %26, %cst_16 {dimension_numbers = #tpu.dot_dimension_numbers<[1], [0], [0], [1], [0, 0, 1, 1], [], []>} : vector<128x128xbf16>, vector<128x128xbf16>, vector<128x128xf32> -> vector<128x128xf32>
      %28 = arith.addf %23, %27 : vector<128x128xf32>
      %c0_17 = arith.constant 0 : index
      %c0_18 = arith.constant 0 : index
      %29 = vector.load %arg8[%c0_17, %c0_18] : memref<128x128xf32, #tpu.memory_space<vmem>>, vector<128x128xf32>
      tpu.vector_store %arg8[%c0_17, %c0_18], %28 {strides = array<i32>} : memref<128x128xf32, #tpu.memory_space<vmem>>, vector<128x128xf32>,
    } else {
    }
    %c0_i32_5 = arith.constant 0 : i32
    %14 = arith.cmpi eq, %arg1, %c0_i32_5 : i32
    %c3_i32 = arith.constant 3 : i32
    %15 = arith.cmpi eq, %arg2, %c3_i32 : i32
    %16 = arith.andi %14, %15 : i1
    %17 = arith.extui %16 : i1 to i32
    %c0_i32_6 = arith.constant 0 : i32
    %18 = arith.cmpi ne, %17, %c0_i32_6 : i32
    scf.if %18 {
      %c0 = arith.constant 0 : index
      %c0_7 = arith.constant 0 : index
      %19 = vector.load %arg8[%c0, %c0_7] : memref<128x128xf32, #tpu.memory_space<vmem>>, vector<128x128xf32>
      %20 = tpu.iota {dimensions = array<i32: 1>} : vector<128x128xi32>
      %c8_i32 = arith.constant 8 : i32
      %21 = vector.broadcast %c8_i32 : i32 to vector<128x128xi32>
      %22 = arith.cmpi slt, %20, %21 : vector<128x128xi32>
      %cst = arith.constant -1.000000e+30 : f32
      %23 = vector.broadcast %cst : f32 to vector<128x128xf32>
      %24 = arith.select %22, %19, %23 : vector<128x128xi1>, vector<128x128xf32>
      %cst_8 = arith.constant dense<0xFF800000> : vector<128xf32>
      %25 = vector.multi_reduction <maximumf>, %24, %cst_8 [1] : vector<128x128xf32> to vector<128xf32>
      %26 = vector.shape_cast %25 : vector<128xf32> to vector<128x1xf32>
      %27 = vector.broadcast %26 : vector<128x1xf32> to vector<128x128xf32>
      %28 = arith.subf %24, %27 : vector<128x128xf32>
      %29 = math.exp %28 : vector<128x128xf32>
      %cst_9 = arith.constant dense<0.000000e+00> : vector<128xf32>
      %30 = vector.multi_reduction <add>, %29, %cst_9 [1] : vector<128x128xf32> to vector<128xf32>
      %31 = vector.shape_cast %30 : vector<128xf32> to vector<128x1xf32>
      %32 = tpu.reciprocal %31 {approx = true} : vector<128x1xf32> -> vector<128x1xf32>
      %33 = vector.broadcast %32 : vector<128x1xf32> to vector<128x128xf32>
      %34 = arith.mulf %29, %33 : vector<128x128xf32>
      %c0_10 = arith.constant 0 : index
      %c0_11 = arith.constant 0 : index
      %35 = vector.load %arg7[%c0_10, %c0_11] : memref<128x128xf32, #tpu.memory_space<vmem>>, vector<128x128xf32>
      tpu.vector_store %arg7[%c0_10, %c0_11], %34 {strides = array<i32>} : memref<128x128xf32, #tpu.memory_space<vmem>>, vector<128x128xf32>,
    } else {
    }
    return
  }
  func.func @transform_0(%arg0: i32, %arg1: i32, %arg2: i32, %arg3: memref<4xi32, #tpu.memory_space<smem>>) -> (i32, i32, i32) {
    %c0_i32 = arith.constant 0 : i32
    return %arg2, %arg0, %arg1 : i32, i32, i32
  }
  func.func @transform_1(%arg0: i32, %arg1: i32, %arg2: i32, %arg3: memref<4xi32, #tpu.memory_space<smem>>) -> (i32, i32) {
    %c0_i32 = arith.constant 0 : i32
    %c0_i32_0 = arith.constant 0 : i32
    return %arg1, %c0_i32 : i32, i32
  }
  func.func @transform_2(%arg0: i32, %arg1: i32, %arg2: i32, %arg3: memref<4xi32, #tpu.memory_space<smem>>) -> (i32, i32, i32) {
    %c0_i32 = arith.constant 0 : i32
    %c0_i32_0 = arith.constant 0 : i32
    %c0_i32_1 = arith.constant 0 : i32
    return %arg2, %c0_i32, %c0_i32_0 : i32, i32, i32
  }
  func.func @transform_3(%arg0: i32, %arg1: i32, %arg2: i32, %arg3: memref<4xi32, #tpu.memory_space<smem>>) -> (i32, i32) {
    %c0_i32 = arith.constant 0 : i32
    %c0_i32_0 = arith.constant 0 : i32
    return %arg0, %c0_i32 : i32, i32
  }
}

module attributes {stable_mosaic.version = 11 : i64} {
  func.func @_rgcn_hidden_kernel(%arg0: i32, %arg1: i32, %arg2: i32, %arg3: memref<4xi32, #tpu.memory_space<smem>>, %arg4: memref<1x128x128xbf16, #tpu.memory_space<vmem>>, %arg5: memref<128x128xbf16, #tpu.memory_space<vmem>>, %arg6: memref<1x128x128xbf16, #tpu.memory_space<vmem>>, %arg7: memref<128x128xbf16, #tpu.memory_space<vmem>>, %arg8: memref<128x128xf32, #tpu.memory_space<vmem>>) attributes {dimension_semantics = [#tpu.dimension_semantics<parallel>, #tpu.dimension_semantics<arbitrary>, #tpu.dimension_semantics<arbitrary>], iteration_bounds = array<i64: 1, 1, 4>, scalar_prefetch = 1 : i64, scratch_operands = 1 : i64, tpu.core_type = #tpu.core_type<tc>, window_params = [{transform_indices = @transform_0, window_bounds = array<i64: 1, 128, 128>}, {transform_indices = @transform_1, window_bounds = array<i64: 128, 128>}, {transform_indices = @transform_2, window_bounds = array<i64: 1, 128, 128>}, {transform_indices = @transform_3, window_bounds = array<i64: 128, 128>}]} {
    %c0_i32 = arith.constant 0 : i32
    %0 = arith.cmpi eq, %arg1, %c0_i32 : i32
    %c0_i32_0 = arith.constant 0 : i32
    %1 = arith.cmpi eq, %arg2, %c0_i32_0 : i32
    %2 = arith.andi %0, %1 : i1
    %3 = arith.extui %2 : i1 to i32
    %c0_i32_1 = arith.constant 0 : i32
    %4 = arith.cmpi ne, %3, %c0_i32_1 : i32
    scf.if %4 {
      %cst = arith.constant 0.000000e+00 : f32
      %19 = vector.broadcast %cst : f32 to vector<128x128xf32>
      %c0 = arith.constant 0 : index
      %c0_7 = arith.constant 0 : index
      %20 = vector.load %arg8[%c0, %c0_7] : memref<128x128xf32, #tpu.memory_space<vmem>>, vector<128x128xf32>
      tpu.vector_store %arg8[%c0, %c0_7], %19 {strides = array<i32>} : memref<128x128xf32, #tpu.memory_space<vmem>>, vector<128x128xf32>,
    } else {
    }
    %c1_i32 = arith.constant 1 : i32
    %5 = arith.muli %arg2, %c1_i32 : i32
    %6 = arith.addi %5, %arg0 : i32
    %c1_i32_2 = arith.constant 1 : i32
    %7 = arith.muli %6, %c1_i32_2 : i32
    %8 = arith.addi %7, %arg1 : i32
    %9 = arith.index_cast %8 : i32 to index
    %10 = memref.load %arg3[%9] : memref<4xi32, #tpu.memory_space<smem>>
    %c0_i32_3 = arith.constant 0 : i32
    %11 = arith.cmpi sgt, %10, %c0_i32_3 : i32
    %12 = arith.extui %11 : i1 to i32
    %c0_i32_4 = arith.constant 0 : i32
    %13 = arith.cmpi ne, %12, %c0_i32_4 : i32
    scf.if %13 {
      %c0 = arith.constant 0 : index
      %c0_7 = arith.constant 0 : index
      %19 = vector.load %arg5[%c0, %c0_7] : memref<128x128xbf16, #tpu.memory_space<vmem>>, vector<128x128xbf16>
      %c0_8 = arith.constant 0 : index
      %c0_9 = arith.constant 0 : index
      %c0_10 = arith.constant 0 : index
      %20 = vector.load %arg6[%c0_8, %c0_9, %c0_10] : memref<1x128x128xbf16, #tpu.memory_space<vmem>>, vector<1x128x128xbf16>
      %21 = vector.shape_cast %20 : vector<1x128x128xbf16> to vector<128x128xbf16>
      %cst = arith.constant dense<0.000000e+00> : vector<128x128xf32>
      %22 = tpu.matmul %19, %21, %cst {dimension_numbers = #tpu.dot_dimension_numbers<[1], [0], [0], [1], [0, 0, 1, 1], [], []>} : vector<128x128xbf16>, vector<128x128xbf16>, vector<128x128xf32> -> vector<128x128xf32>
      %c0_11 = arith.constant 0 : index
      %c0_12 = arith.constant 0 : index
      %23 = vector.load %arg8[%c0_11, %c0_12] : memref<128x128xf32, #tpu.memory_space<vmem>>, vector<128x128xf32>
      %c0_13 = arith.constant 0 : index
      %c0_14 = arith.constant 0 : index
      %c0_15 = arith.constant 0 : index
      %24 = vector.load %arg4[%c0_13, %c0_14, %c0_15] : memref<1x128x128xbf16, #tpu.memory_space<vmem>>, vector<1x128x128xbf16>
      %25 = vector.shape_cast %24 : vector<1x128x128xbf16> to vector<128x128xbf16>
      %26 = arith.truncf %22 : vector<128x128xf32> to vector<128x128xbf16>
      %cst_16 = arith.constant dense<0.000000e+00> : vector<128x128xf32>
      %27 = tpu.matmul %25, %26, %cst_16 {dimension_numbers = #tpu.dot_dimension_numbers<[1], [0], [0], [1], [0, 0, 1, 1], [], []>} : vector<128x128xbf16>, vector<128x128xbf16>, vector<128x128xf32> -> vector<128x128xf32>
      %28 = arith.addf %23, %27 : vector<128x128xf32>
      %c0_17 = arith.constant 0 : index
      %c0_18 = arith.constant 0 : index
      %29 = vector.load %arg8[%c0_17, %c0_18] : memref<128x128xf32, #tpu.memory_space<vmem>>, vector<128x128xf32>
      tpu.vector_store %arg8[%c0_17, %c0_18], %28 {strides = array<i32>} : memref<128x128xf32, #tpu.memory_space<vmem>>, vector<128x128xf32>,
    } else {
    }
    %c0_i32_5 = arith.constant 0 : i32
    %14 = arith.cmpi eq, %arg1, %c0_i32_5 : i32
    %c3_i32 = arith.constant 3 : i32
    %15 = arith.cmpi eq, %arg2, %c3_i32 : i32
    %16 = arith.andi %14, %15 : i1
    %17 = arith.extui %16 : i1 to i32
    %c0_i32_6 = arith.constant 0 : i32
    %18 = arith.cmpi ne, %17, %c0_i32_6 : i32
    scf.if %18 {
      %c0 = arith.constant 0 : index
      %c0_7 = arith.constant 0 : index
      %19 = vector.load %arg8[%c0, %c0_7] : memref<128x128xf32, #tpu.memory_space<vmem>>, vector<128x128xf32>
      %cst = arith.constant 0.000000e+00 : f32
      %20 = vector.broadcast %cst : f32 to vector<128x128xf32>
      %21 = arith.maximumf %19, %20 : vector<128x128xf32>
      %22 = arith.truncf %21 : vector<128x128xf32> to vector<128x128xbf16>
      %c0_8 = arith.constant 0 : index
      %c0_9 = arith.constant 0 : index
      %23 = vector.load %arg7[%c0_8, %c0_9] : memref<128x128xbf16, #tpu.memory_space<vmem>>, vector<128x128xbf16>
      tpu.vector_store %arg7[%c0_8, %c0_9], %22 {strides = array<i32>} : memref<128x128xbf16, #tpu.memory_space<vmem>>, vector<128x128xbf16>,
    } else {
    }
    return
  }
  func.func @transform_0(%arg0: i32, %arg1: i32, %arg2: i32, %arg3: memref<4xi32, #tpu.memory_space<smem>>) -> (i32, i32, i32) {
    %c0_i32 = arith.constant 0 : i32
    return %arg2, %arg0, %arg1 : i32, i32, i32
  }
  func.func @transform_1(%arg0: i32, %arg1: i32, %arg2: i32, %arg3: memref<4xi32, #tpu.memory_space<smem>>) -> (i32, i32) {
    %c0_i32 = arith.constant 0 : i32
    %c0_i32_0 = arith.constant 0 : i32
    return %arg1, %c0_i32 : i32, i32
  }
  func.func @transform_2(%arg0: i32, %arg1: i32, %arg2: i32, %arg3: memref<4xi32, #tpu.memory_space<smem>>) -> (i32, i32, i32) {
    %c0_i32 = arith.constant 0 : i32
    %c0_i32_0 = arith.constant 0 : i32
    %c0_i32_1 = arith.constant 0 : i32
    return %arg2, %c0_i32, %c0_i32_0 : i32, i32, i32
  }
  func.func @transform_3(%arg0: i32, %arg1: i32, %arg2: i32, %arg3: memref<4xi32, #tpu.memory_space<smem>>) -> (i32, i32) {
    %c0_i32 = arith.constant 0 : i32
    %c0_i32_0 = arith.constant 0 : i32
    return %arg0, %c0_i32 : i32, i32
  }
}

</mosaic_0001>

<bundles_post_ra>
// kernel: rgcn_forward.3
= control target key start
LH: loop header
LB: loop body
LE: loop exit
PB: predicated region body
PF: predicated region fallthrough
CT: control target
= control target key end

     0   :  { %s1355_s0 = inlined_call_operand.vmem [shape: s32[4], index: 0, kind: input, shape index: {}]   ;;  %s1356_s1 = inlined_call_operand.hbm [shape: bf16[4,128,128], index: 1, kind: input, shape index: {}]   ;;  %s1357_s2 = inlined_call_operand.hbm [shape: bf16[4,128,128], index: 2, kind: input, shape index: {}]   ;;  %s1358_s3 = inlined_call_operand.vmem [shape: bf16[128,128], index: 3, kind: output, shape index: {}]  }
   0x1   :  { %s8_s14 = sshll.u32 %s1355_s0, 4  ;;  %s9_s14 = int_to_ptr.vmem [resolvable:$true] %s8_s14 }
   0x2   :  { %s1032_s15 = scalar_lea.vmem %s9_s14, 16  ;;  %p1037_p1 = scmp.lt.s32.totalorder %s9_s14, %s9_s14 }
   0x3   :  { %p1033_p0 = scmp.ne.s32.totalorder %s9_s14, %s1032_s15  ;;  %p1038_p2 = scmp.lt.s32.totalorder %s1032_s15, %s1032_s15 }
   0x5   :  { %p1039_p3 = por %p1038_p2, %p1037_p1 }
   0x7   :  { %p1040_p4 = pnand %p1039_p3, %p1033_p0 }
   0x9   :  { %1043 = shalt.err (!%p1040_p4)  }
   0xa   :  { %s1158_s16 = smov [#allocation4]  }
   0xb   :  { %11 = dma.vmem_to_smem %s9_s14, 16, %s1158_s16, [#allocation3] }
   0xc   :  { %1124 = dma.done.wait [#allocation3], 16 }
   0xd   :  { %1125 = vsyncadd [#allocation3], 4294967280 }
   0xe   :  { %13 = sfence }
   0xf   :  { %14 = vsyncpa [#allocation6], 0 }
  0x10   :  { %16 = vsyncpa [#allocation6 + $0x1], 0 }
  0x11   :  { %17 = vsyncpa [#allocation8], 0 }
  0x12   :  { %19 = vsyncpa [#allocation8 + $0x1], 0  ;;  %s1187_s17 = smov 0   ;;  %s1189_s0 = smov 0  }
  0x13   :  { %s1191_s18 = smov 0   ;;  %s1193_s19 = smov 0  }
  0x14   :  { %s1195_s20 = smov 0   ;;  %s1197_s21 = smov 0  }
  0x15 LB: > { %s770_s22 = sadd.s32 4294967295, %s1156_s21   ;;  %s37_s23 = sadd.s32 1, %s1152_s20  ;;  %s1156_s21 = sphi %s1197_s21, %s25_s21   ;;  %s1152_s20 = sphi %s1195_s20, %s1367_s20   ;;  %s1148_s19 = sphi %s1193_s19, %s1366_s19   ;;  %s1144_s18 = sphi %s1191_s18, %s1365_s18   ;;  %s1140_s0 = sphi %s1189_s0, %s1364_s0   ;;  %s1136_s17 = sphi %s1187_s17, %s1363_s17  }
  0x16   : > { %p38_p5 = scmp.ge.s32.totalorder %s37_s23, 4  ;;  %s55_s24 = sadd.s32 1, %s1144_s18 }
  0x17   : > { %p62_p6 = scmp.ne.s32.totalorder %s1144_s18, %s1140_s0  ;;  %p63_p7 = scmp.eq.s32.totalorder %s1156_s21, 0 }
  0x18   : > { %s1369_s23 = smov (%p38_p5, %s37_s23), 0  ;;  %p68_p9 = scmp.ne.s32.totalorder %s1140_s0, %s1136_s17 }
  0x19   : > { %p1223_p8 = por %p63_p7, %p62_p6  ;;  %s48_s26 = ssub.s32 %s1152_s20, %s1369_s23 }
  0x1a   : > { %p69_p10 = scmp.eq.s32.totalorder %s770_s22, 0  ;;  %p53_p11 = scmp.eq.s32.totalorder %s48_s26, 0 }
  0x1b   : > { %p963_p13 = scmp.lt.s32.totalorder %s1156_s21, 4  ;;  %s1239_s29 = sand.u32 1, %s1144_s18  }
  0x1c   : > { %p1230_p12 = por %p69_p10, %p68_p9  ;;  %s821_s30 = sshll.u32 %s1152_s20, 10 }
  0x1d   : > { %s1236_s28 = scalar_select %p53_p11, %s1144_s18, %s55_s24  }
  0x1e   : > { %s773_s4 = sshll.u32 %s1239_s29, 6  ;;  %s159_s7 = scalar_lea.hbm %s1356_s1, %s821_s30 }
  0x1f   : > { %s150_s8 = scalar_lea.vmem [#allocation5], %s773_s4  ;;  %p1250_p0 = pnand %p963_p13, %p1223_p8 }
  0x20   : > { %s160_s9 = sshll.u32 %s150_s8, 4  ;;  %s147_s11 = scalar_lea.sflag [#allocation6], %s1239_s29  ;;  %s161_s9 = int_to_ptr.vmem [resolvable:$true] %s160_s9 }
  0x21   : > { %p1046_p1 = pneg %p1250_p0  ;;  %s1057_s12 = scalar_lea.vmem %s161_s9, 1024 }
  0x22   : > { %p1058_p2 = scmp.ne.s32.totalorder %s161_s9, %s1057_s12  ;;  %s1159_s13 = smov [#allocation5]  }
  0x23   : > { %s1062_s14 = sshll.u32 %s1159_s13, 4  ;;  %s1063_s14 = int_to_ptr.vmem [resolvable:$false] %s1062_s14 }
  0x24   : > { %p1060_p3 = pnand %p1058_p2, %p1046_p1  ;;  %s1064_s15 = scalar_lea.vmem %s1063_s14, 2048 }
  0x25   : > { %p1065_p5 = scmp.lt.s32.totalorder %s161_s9, %s1063_s14  ;;  %p1066_p6 = scmp.lt.s32.totalorder %s1064_s15, %s1057_s12 }
  0x26   : > { %p1061_p4 = pneg %p1060_p3 }
  0x27   : > { %p1067_p7 = por %p1066_p6, %p1065_p5 }
  0x29   : > { %p1068_p8 = pnand %p1067_p7, %p1061_p4 }
  0x2b   : > { %1071 = shalt.err (!%p1068_p8)
}
  0x2c   : > { %s1160_s16 = smov 64   ;;  %s1161_s17 = smov 4  }
  0x2d   : > { %959 = dma.hbm_to_vmem [thread:$0]  (!%p1250_p0), %s159_s7, 1024, %s161_s9, %s147_s11, %s1160_s16, %s1160_s16, %s1161_s17  }
  0x2e   : > { %p779_p9 = scmp.ge.s32.totalorder %s1156_s21, 1  ;;  %p191_p10 = scmp.lt.s32.totalorder %s1156_s21, 5 }
  0x2f   : > { %s182_s26 = scalar_lea.hbm %s1357_s2, %s821_s30  ;;  %s174_s5 = scalar_lea.vmem [#allocation7], %s773_s4 }
  0x30   : > { %p1264_p11 = pnand %p779_p9, %p191_p10  ;;  %s183_s6 = sshll.u32 %s174_s5, 4  ;;  %s184_s6 = int_to_ptr.vmem [resolvable:$true] %s183_s6 }
  0x31   : > { %s171_s8 = scalar_lea.sflag [#allocation8], %s1239_s29  ;;  %s1085_s12 = scalar_lea.vmem %s184_s6, 1024 }
  0x32   : > { %p1086_p13 = scmp.ne.s32.totalorder %s184_s6, %s1085_s12  ;;  %s1162_s7 = smov [#allocation7]  }
  0x33   : > { %s1090_s9 = sshll.u32 %s1162_s7, 4  ;;  %s1091_s9 = int_to_ptr.vmem [resolvable:$false] %s1090_s9 }
  0x34   : > { %p1088_p2 = pnand %p1086_p13, %p1046_p1  ;;  %s1092_s11 = scalar_lea.vmem %s1091_s9, 2048 }
  0x35   : > { %p1093_p4 = scmp.lt.s32.totalorder %s184_s6, %s1091_s9  ;;  %p1094_p5 = scmp.lt.s32.totalorder %s1092_s11, %s1085_s12 }
  0x36   : > { %p1089_p3 = pneg %p1088_p2 }
  0x37   : > { %p1095_p6 = por %p1094_p5, %p1093_p4 }
  0x39   : > { %p1096_p7 = pnand %p1095_p6, %p1089_p3 }
  0x3b   : > { %1099 = shalt.err (!%p1096_p7)
}
  0x3c   : > { %962 = dma.hbm_to_vmem [thread:$0]  (!%p1250_p0), %s182_s26, 1024, %s184_s6, %s171_s8, %s1160_s16, %s1160_s16, %s1161_s17  }
  0x3d   : > { %195 = sbr.rel (%p1264_p11) target bundleno = 347 (0x15b), region = 28  ;;  %s197_s29 = sand.u32 (!%p1264_p11), 1, %s1140_s0  }
  0x3e   : > { %s780_s30 = sshll.u32 (!%p1264_p11), %s197_s29, 6  ;;  %s198_s4 = scalar_lea.sflag (!%p1264_p11), [#allocation6], %s197_s29 }
  0x3f   : > { %s1282_s13 = scalar_lea.vmem (!%p1264_p11), [#allocation5], %s780_s30 }
  0x42   : > { %1127 = dma.done.wait (%p1230_p12), %s198_s4, 1024  }
  0x43   : > { %1129 = vsyncadd (%p1230_p12), %s198_s4, 4294966272  ;;  %s207_s14 = scalar_lea.sflag [#allocation8], %s197_s29  ;;  %s1288_s15 = scalar_lea.vmem [#allocation7], %s780_s30 }
  0x44   : > { %1131 = dma.done.wait (%p1230_p12), %s207_s14, 1024  }
  0x45   : > { %1133 = vsyncadd (%p1230_p12), %s207_s14, 4294966272  ;;  %p246_p0 = scmp.eq.s32.totalorder %s1148_s19, 0 }
  0x46   : > { %v1163_v0 = vmov (%p246_p0), 0.0  }
  0x47   : > { %250 = sbr.rel (!%p246_p0) target bundleno = 79 (0x4f), region = 40  ;;  %251 = vst [vmem:[#allocation2 + $0x30] sm:$0xff] (%p246_p0), %v1163_v0  ;;  %252 = vst [vmem:[#allocation2] sm:$0xff] (%p246_p0), %v1163_v0 }
  0x48   : > { %253 = vst [vmem:[#allocation2 + $0x58] sm:$0xff] (%p246_p0), %v1163_v0  ;;  %254 = vst [vmem:[#allocation2 + $0x18] sm:$0xff] (%p246_p0), %v1163_v0 }
  0x49   : > { %255 = vst [vmem:[#allocation2 + $0x50] sm:$0xff] (%p246_p0), %v1163_v0  ;;  %256 = vst [vmem:[#allocation2 + $0x68] sm:$0xff] (%p246_p0), %v1163_v0 }
  0x4a   : > { %257 = vst [vmem:[#allocation2 + $0x8] sm:$0xff] (%p246_p0), %v1163_v0  ;;  %258 = vst [vmem:[#allocation2 + $0x48] sm:$0xff] (%p246_p0), %v1163_v0 }
  0x4b   : > { %259 = vst [vmem:[#allocation2 + $0x40] sm:$0xff] (%p246_p0), %v1163_v0  ;;  %260 = vst [vmem:[#allocation2 + $0x20] sm:$0xff] (%p246_p0), %v1163_v0 }
  0x4c   : > { %261 = vst [vmem:[#allocation2 + $0x10] sm:$0xff] %v1163_v0  ;;  %262 = vst [vmem:[#allocation2 + $0x38] sm:$0xff] %v1163_v0 }
  0x4d   : > { %263 = vst [vmem:[#allocation2 + $0x60] sm:$0xff] %v1163_v0  ;;  %264 = vst [vmem:[#allocation2 + $0x70] sm:$0xff] %v1163_v0 }
  0x4e   : > { %265 = vst [vmem:[#allocation2 + $0x78] sm:$0xff] %v1163_v0  ;;  %266 = vst [vmem:[#allocation2 + $0x28] sm:$0xff] %v1163_v0 }
  0x4f PF: > { %s269_s27 = sld [smem:[#allocation4 + %s1148_s19]] }
  0x55   : > { %p783_p12 = scmp.le.s32.totalorder %s269_s27, 0 }
  0x57   : > { %273 = sbr.rel (%p783_p12) target bundleno = 335 (0x14f), region = 44 }
  0x5c   : > { %v1016_v1 = vld [vmem:[%s1288_s15 + $0x38] sm:$0xff]   ;;  %v1017_v2 = vld [vmem:[%s1288_s15 + $0x30] sm:$0xff]   ;;  %v1018_v3 = vld [vmem:[%s1288_s15 + $0x28] sm:$0xff]  }
  0x5d   : > { %904 = vmatprep.subr.bf16.mxu0 %v1016_v1  ;;  %936 = vmatprep.subr.bf16.mxu1 %v1016_v1  ;;  %v1019_v4 = vld [vmem:[%s1288_s15 + $0x20] sm:$0xff]   ;;  %v1020_v7 = vld [vmem:[%s1288_s15 + $0x18] sm:$0xff]   ;;  %v1021_v8 = vld [vmem:[%s1288_s15 + $0x10] sm:$0xff]  }
  0x5e   : > { %905 = vmatpush3.bf16.msra.mxu0 %v1016_v1  ;;  %944 = vmatpush3.bf16.msra.mxu1 %v1016_v1  ;;  %v1024_v5 = vld [vmem:[%s1282_s13] sm:$0xff]   ;;  %v1022_v9 = vld [vmem:[%s1288_s15 + $0x8] sm:$0xff]   ;;  %v1028_v13 = vld [vmem:[%s1282_s13 + $0x10] sm:$0xff]  }
  0x5f   : > { %906 = vmatprep.subr.bf16.mxu0 %v1017_v2  ;;  %937 = vmatprep.subr.bf16.mxu1 %v1017_v2  ;;  %v1025_v6 = vld [vmem:[%s1282_s13 + $0x20] sm:$0xff]   ;;  %v1026_v11 = vld [vmem:[%s1282_s13 + $0x8] sm:$0xff]   ;;  %v1029_v14 = vld [vmem:[%s1282_s13 + $0x30] sm:$0xff]  }
  0x60   : > { %920 = vmatprep.mubr.bf16.mxu0 %v1024_v5  ;;  %928 = vmatprep.mubr.bf16.mxu1 %v1025_v6  ;;  %v1023_v10 = vld [vmem:[%s1288_s15] sm:$0xff]   ;;  %v1027_v12 = vld [vmem:[%s1282_s13 + $0x28] sm:$0xff]   ;;  %v1030_v15 = vld [vmem:[%s1282_s13 + $0x18] sm:$0xff]  }
  0x61   : > { %v1031_v16 = vld [vmem:[%s1282_s13 + $0x38] sm:$0xff]   ;;  %v284_v18 = vld [vmem:[#allocation2 + $0x10] sm:$0xff]  ;;  %v282_v22 = vld [vmem:[#allocation2 + $0x40] sm:$0xff] }
  0x62   : > { %907 = vmatpush3.bf16.msra.mxu0 %v1017_v2  ;;  %945 = vmatpush3.bf16.msra.mxu1 %v1017_v2  ;;  %v276_v17 = vld [vmem:[#allocation2 + $0x58] sm:$0xff]  ;;  %v274_v21 = vld [vmem:[#allocation2 + $0x30] sm:$0xff]  ;;  %v275_v33 = vld [vmem:[#allocation2] sm:$0xff] }
  0x63   : > { %908 = vmatprep.subr.bf16.mxu0 %v1018_v3  ;;  %938 = vmatprep.subr.bf16.mxu1 %v1018_v3  ;;  %v277_v27 = vld [vmem:[#allocation2 + $0x18] sm:$0xff]  ;;  %v283_v34 = vld [vmem:[#allocation2 + $0x20] sm:$0xff]  ;;  %v280_v39 = vld [vmem:[#allocation2 + $0x8] sm:$0xff] }
  0x64   : > { %v285_v28 = vld [vmem:[#allocation2 + $0x38] sm:$0xff]  ;;  %v278_v45 = vld [vmem:[#allocation2 + $0x50] sm:$0xff]  ;;  %v286_v46 = vld [vmem:[#allocation2 + $0x60] sm:$0xff] }
  0x65   : > { %v288_v40 = vld [vmem:[#allocation2 + $0x78] sm:$0xff]  ;;  %v281_v51 = vld [vmem:[#allocation2 + $0x48] sm:$0xff]  ;;  %v287_v58 = vld [vmem:[#allocation2 + $0x70] sm:$0xff] }
  0x66   : > { %909 = vmatpush3.bf16.msra.mxu0 %v1018_v3  ;;  %946 = vmatpush3.bf16.msra.mxu1 %v1018_v3  ;;  %v289_v52 = vld [vmem:[#allocation2 + $0x28] sm:$0xff] }
  0x67   : > { %910 = vmatprep.subr.bf16.mxu0 %v1019_v4  ;;  %939 = vmatprep.subr.bf16.mxu1 %v1019_v4  ;;  %v279_v57 = vld [vmem:[#allocation2 + $0x68] sm:$0xff] }
  0x6a   : > { %911 = vmatpush3.bf16.msra.mxu0 %v1019_v4  ;;  %947 = vmatpush3.bf16.msra.mxu1 %v1019_v4 }
  0x6b   : > { %912 = vmatprep.subr.bf16.mxu0 %v1020_v7  ;;  %940 = vmatprep.subr.bf16.mxu1 %v1020_v7 }
  0x6e   : > { %913 = vmatpush3.bf16.msra.mxu0 %v1020_v7  ;;  %948 = vmatpush3.bf16.msra.mxu1 %v1020_v7 }
  0x6f   : > { %914 = vmatprep.subr.bf16.mxu0 %v1021_v8  ;;  %941 = vmatprep.subr.bf16.mxu1 %v1021_v8 }
  0x72   : > { %915 = vmatpush3.bf16.msra.mxu0 %v1021_v8  ;;  %949 = vmatpush3.bf16.msra.mxu1 %v1021_v8 }
  0x73   : > { %916 = vmatprep.subr.bf16.mxu0 %v1022_v9  ;;  %942 = vmatprep.subr.bf16.mxu1 %v1022_v9 }
  0x76   : > { %917 = vmatpush3.bf16.msra.mxu0 %v1022_v9  ;;  %950 = vmatpush3.bf16.msra.mxu1 %v1022_v9 }
  0x77   : > { %918 = vmatprep.subr.bf16.mxu0 %v1023_v10  ;;  %943 = vmatprep.subr.bf16.mxu1 %v1023_v10 }
  0x7a   : > { %919 = vmatpush3.bf16.msra.mxu0 %v1023_v10  ;;  %951 = vmatpush3.bf16.msra.mxu1 %v1023_v10 }
  0x7d   : > { %921 = vmatmul.mubr.bf16.vlgmr.msra.gmra.mxu0 %v1026_v11  ;;  %929 = vmatmul.mubr.bf16.vlgmr.msra.gmra.mxu1 %v1027_v12 }
  0x7e   : > { %924 = vmatprep.mubr.bf16.mxu0 %v1028_v13  ;;  %932 = vmatprep.mubr.bf16.mxu1 %v1029_v14 }
  0x85   : > { %925 = vmatmul.mubr.bf16.gmra.mxu0 %v1030_v15  ;;  %933 = vmatmul.mubr.bf16.gmra.mxu1 %v1031_v16 }
 0x13d   : > { %v922_v19 = vpop.f32.mrf.mxu0  ;;  %v930_v20 = vpop.f32.mrf.mxu1 }
 0x13e   : > { %v517_v23 = vadd.f32 %v922_v19, %v276_v17  ;;  %v525_v24 = vadd.f32 %v930_v20, %v284_v18 }
 0x13f   : > { %v452_v25 = vpop.f32.mrf.mxu0  ;;  %v484_v26 = vpop.f32.mrf.mxu1 }
 0x140   : > { %533 = vst [vmem:[#allocation2 + $0x58] sm:$0xff] %v517_v23  ;;  %541 = vst [vmem:[#allocation2 + $0x10] sm:$0xff] %v525_v24  ;;  %v515_v29 = vadd.f32 %v452_v25, %v274_v21  ;;  %v523_v30 = vadd.f32 %v484_v26, %v282_v22 }
 0x141   : > { %v923_v31 = vpop.f32.mrf.mxu0  ;;  %v931_v32 = vpop.f32.mrf.mxu1 }
 0x142   : > { %531 = vst [vmem:[#allocation2 + $0x30] sm:$0xff] %v515_v29  ;;  %539 = vst [vmem:[#allocation2 + $0x40] sm:$0xff] %v523_v30  ;;  %v518_v35 = vadd.f32 %v923_v31, %v277_v27  ;;  %v526_v36 = vadd.f32 %v931_v32, %v285_v28 }
 0x143   : > { %v455_v37 = vpop.f32.mrf.mxu0  ;;  %v487_v38 = vpop.f32.mrf.mxu1 }
 0x144   : > { %534 = vst [vmem:[#allocation2 + $0x18] sm:$0xff] %v518_v35  ;;  %542 = vst [vmem:[#allocation2 + $0x38] sm:$0xff] %v526_v36  ;;  %v516_v41 = vadd.f32 %v455_v37, %v275_v33  ;;  %v524_v42 = vadd.f32 %v487_v38, %v283_v34 }
 0x145   : > { %v926_v43 = vpop.f32.mrf.mxu0  ;;  %v934_v44 = vpop.f32.mrf.mxu1 }
 0x146   : > { %532 = vst [vmem:[#allocation2] sm:$0xff] %v516_v41  ;;  %540 = vst [vmem:[#allocation2 + $0x20] sm:$0xff] %v524_v42  ;;  %v521_v47 = vadd.f32 %v926_v43, %v280_v39  ;;  %v529_v48 = vadd.f32 %v934_v44, %v288_v40 }
 0x147   : > { %v468_v49 = vpop.f32.mrf.mxu0  ;;  %v500_v50 = vpop.f32.mrf.mxu1 }
 0x148   : > { %537 = vst [vmem:[#allocation2 + $0x8] sm:$0xff] %v521_v47  ;;  %545 = vst [vmem:[#allocation2 + $0x78] sm:$0xff] %v529_v48  ;;  %v519_v53 = vadd.f32 %v468_v49, %v278_v45  ;;  %v527_v54 = vadd.f32 %v500_v50, %v286_v46 }
 0x149   : > { %v927_v55 = vpop.f32.mrf.mxu0  ;;  %v935_v56 = vpop.f32.mrf.mxu1 }
 0x14a   : > { %535 = vst [vmem:[#allocation2 + $0x50] sm:$0xff] %v519_v53  ;;  %543 = vst [vmem:[#allocation2 + $0x60] sm:$0xff] %v527_v54  ;;  %v522_v59 = vadd.f32 %v927_v55, %v281_v51  ;;  %v530_v60 = vadd.f32 %v935_v56, %v289_v52 }
 0x14b   : > { %v471_v61 = vpop.f32.mrf.mxu0  ;;  %v503_v62 = vpop.f32.mrf.mxu1 }
 0x14c   : > { %538 = vst [vmem:[#allocation2 + $0x48] sm:$0xff] %v522_v59  ;;  %546 = vst [vmem:[#allocation2 + $0x28] sm:$0xff] %v530_v60  ;;  %v520_v63 = vadd.f32 %v471_v61, %v279_v57  ;;  %v528_v0 = vadd.f32 %v503_v62, %v287_v58 }
 0x14e   : > { %536 = vst [vmem:[#allocation2 + $0x68] sm:$0xff] %v520_v63  ;;  %544 = vst [vmem:[#allocation2 + $0x70] sm:$0xff] %v528_v0 }
 0x14f PF: > { %p547_p1 = scmp.eq.s32.totalorder %s1148_s19, 3 }
 0x150   : > { %v552_v1 = vld [vmem:[#allocation2 + $0x30] sm:$0xff] (%p547_p1)  ;;  %v553_v2 = vld [vmem:[#allocation2] sm:$0xff] (%p547_p1)  ;;  %v554_v3 = vld [vmem:[#allocation2 + $0x58] sm:$0xff] (%p547_p1) }
 0x151   : > { %551 = sbr.rel (!%p547_p1) target bundleno = 347 (0x15b), region = 48  ;;  %v568_v4 = vmax.f32 (%p547_p1), %v552_v1, 0.0  ;;  %v569_v5 = vmax.f32 (%p547_p1), %v553_v2, 0.0  ;;  %v555_v6 = vld [vmem:[#allocation2 + $0x18] sm:$0xff] (%p547_p1)  ;;  %v570_v7 = vmax.f32 (%p547_p1), %v554_v3, 0.0  ;;  %v556_v8 = vld [vmem:[#allocation2 + $0x50] sm:$0xff] (%p547_p1) }
 0x152   : > { %v571_v10 = vmax.f32 (%p547_p1), %v555_v6, 0.0  ;;  %v572_v11 = vmax.f32 (%p547_p1), %v556_v8, 0.0  ;;  %v558_v13 = vld [vmem:[#allocation2 + $0x8] sm:$0xff] (%p547_p1)  ;;  %v560_v15 = vld [vmem:[#allocation2 + $0x40] sm:$0xff] (%p547_p1)  ;;  %v562_v21 = vld [vmem:[#allocation2 + $0x10] sm:$0xff] (%p547_p1) }
 0x153   : > { %v559_v14 = vld [vmem:[#allocation2 + $0x48] sm:$0xff] (%p547_p1)  ;;  %v844_v16 = vpack.c.bf16 (%p547_p1), %v569_v5, %v568_v4  ;;  %v574_v17 = vmax.f32 (%p547_p1), %v558_v13, 0.0  ;;  %v561_v19 = vld [vmem:[#allocation2 + $0x20] sm:$0xff] (%p547_p1)  ;;  %v576_v20 = vmax.f32 (%p547_p1), %v560_v15, 0.0  ;;  %v563_v22 = vld [vmem:[#allocation2 + $0x38] sm:$0xff] (%p547_p1)  ;;  %v578_v26 = vmax.f32 (%p547_p1), %v562_v21, 0.0 }
 0x154   : > { %v575_v18 = vmax.f32 (%p547_p1), %v559_v14, 0.0  ;;  %v849_v23 = vpack.c.bf16 (%p547_p1), %v571_v10, %v570_v7  ;;  %v577_v25 = vmax.f32 (%p547_p1), %v561_v19, 0.0  ;;  %v564_v27 = vld [vmem:[#allocation2 + $0x60] sm:$0xff] (%p547_p1)  ;;  %v566_v29 = vld [vmem:[#allocation2 + $0x78] sm:$0xff] (%p547_p1)  ;;  %v579_v31 = vmax.f32 (%p547_p1), %v563_v22, 0.0  ;;  %v567_v34 = vld [vmem:[#allocation2 + $0x28] sm:$0xff] (%p547_p1) }
 0x155   : > { %v557_v9 = vld [vmem:[#allocation2 + $0x68] sm:$0xff] (%p547_p1)  ;;  %v565_v28 = vld [vmem:[#allocation2 + $0x70] sm:$0xff] (%p547_p1)  ;;  %845 = vst [vmem:[%s1358_s3] sm:$0xff] (%p547_p1), %v844_v16   ;;  %v580_v32 = vmax.f32 (%p547_p1), %v564_v27, 0.0  ;;  %v582_v36 = vmax.f32 (%p547_p1), %v566_v29, 0.0  ;;  %v583_v37 = vmax.f32 (%p547_p1), %v567_v34, 0.0 }
 0x156   : > { %v573_v12 = vmax.f32 %v557_v9, 0.0  ;;  %v859_v30 = vpack.c.bf16 %v575_v18, %v574_v17  ;;  %v581_v33 = vmax.f32 %v565_v28, 0.0  ;;  %881 = vst [vmem:[%s1358_s3 + $0x8] sm:$0xff] %v849_v23   ;;  %v864_v35 = vpack.c.bf16 %v577_v25, %v576_v20 }
 0x157   : > { %v869_v38 = vpack.c.bf16 %v579_v31, %v578_v26  ;;  %v879_v40 = vpack.c.bf16 %v583_v37, %v582_v36 }
 0x158   : > { %v854_v24 = vpack.c.bf16 %v573_v12, %v572_v11  ;;  %883 = vst [vmem:[%s1358_s3 + $0x18] sm:$0xff] %v859_v30   ;;  %v874_v39 = vpack.c.bf16 %v581_v33, %v580_v32  ;;  %884 = vst [vmem:[%s1358_s3 + $0x20] sm:$0xff] %v864_v35  }
 0x159   : > { %885 = vst [vmem:[%s1358_s3 + $0x28] sm:$0xff] %v869_v38   ;;  %887 = vst [vmem:[%s1358_s3 + $0x38] sm:$0xff] %v879_v40  }
 0x15a   : > { %882 = vst [vmem:[%s1358_s3 + $0x10] sm:$0xff] %v854_v24   ;;  %886 = vst [vmem:[%s1358_s3 + $0x30] sm:$0xff] %v874_v39  }
 0x15b PF: > { %s25_s21 = sadd.s32 1, %s1156_s21   ;;  %s1363_s17 = smov %s1140_s0 }
 0x15c   : > { %p22_p8 = scmp.ge.s32.totalorder %s25_s21, 6   ;;  %s1364_s0 = smov %s1144_s18 }
 0x15d   : > { %s1365_s18 = smov %s1236_s28  ;;  %s1366_s19 = smov %s1152_s20 }
 0x15e   : > { %s1367_s20 = smov %s1369_s23  ;;  %24 = sbr.rel (!%p22_p8) target bundleno = 21 (0x15), region = 93 }
 0x163   :  { %686 = vsyncpa [#allocation6], 1 }
 0x164   :  { %688 = vsyncpa [#allocation6 + $0x1], 1 }
 0x165   :  { %689 = vsyncpa [#allocation8], 1 }
 0x166   :  { %691 = vsyncpa [#allocation8 + $0x1], 1 }

// kernel: rgcn_forward.4
= control target key start
LH: loop header
LB: loop body
LE: loop exit
PB: predicated region body
PF: predicated region fallthrough
CT: control target
= control target key end

     0   :  { %s1402_s0 = inlined_call_operand.vmem [shape: s32[4], index: 0, kind: input, shape index: {}]   ;;  %s1403_s1 = inlined_call_operand.vmem [shape: bf16[4,128,128], index: 1, kind: input, shape index: {}]   ;;  %s1404_s2 = inlined_call_operand.vmem [shape: bf16[128,128], index: 2, kind: input, shape index: {}]   ;;  %s1405_s3 = inlined_call_operand.vmem [shape: bf16[4,128,128], index: 3, kind: input, shape index: {}]   ;;  %s1406_s4 = inlined_call_operand.vmem [shape: bf16[128,128], index: 4, kind: output, shape index: {}]  }
   0x1   :  { %s9_s17 = sshll.u32 %s1402_s0, 4  ;;  %s10_s17 = int_to_ptr.vmem [resolvable:$true] %s9_s17 }
   0x2   :  { %s1226_s18 = scalar_lea.vmem %s10_s17, 16  ;;  %p1231_p1 = scmp.lt.s32.totalorder %s10_s17, %s10_s17 }
   0x3   :  { %p1227_p0 = scmp.ne.s32.totalorder %s10_s17, %s1226_s18  ;;  %p1232_p2 = scmp.lt.s32.totalorder %s1226_s18, %s1226_s18 }
   0x5   :  { %p1233_p3 = por %p1232_p2, %p1231_p1 }
   0x7   :  { %p1234_p4 = pnand %p1233_p3, %p1227_p0 }
   0x9   :  { %1237 = shalt.err (!%p1234_p4)  }
   0xa   :  { %s1264_s19 = smov [#allocation4]  }
   0xb   :  { %12 = dma.vmem_to_smem %s10_s17, 16, %s1264_s19, [#allocation3] }
   0xc   :  { %1250 = dma.done.wait [#allocation3], 16 }
   0xd   :  { %1251 = vsyncadd [#allocation3], 4294967280 }
   0xe   :  { %14 = sfence }
   0xf   :  { %s1294_s20 = smov 0   ;;  %s1296_s21 = smov 0  }
  0x10   :  { %s1298_s22 = smov 0  }
  0x11 LB: > { %s32_s0 = sadd.s32 1, %s1258_s21  ;;  %p961_p5 = scmp.ge.s32.totalorder %s1262_s22, 1  ;;  %s1262_s22 = sphi %s1298_s22, %s20_s22   ;;  %s1258_s21 = sphi %s1296_s21, %s1408_s21   ;;  %s1254_s20 = sphi %s1294_s20, %s1407_s20  }
  0x12   : > { %p33_p6 = scmp.ge.s32.totalorder %s32_s0, 4  ;;  %p196_p7 = scmp.lt.s32.totalorder %s1262_s22, 5 }
  0x14   : > { %s1410_s0 = smov (%p33_p6, %s32_s0), 0  ;;  %p197_p8 = pnand %p961_p5, %p196_p7 }
  0x15   : > { %p238_p9 = scmp.lt.s32.totalorder (!%p197_p8), %s1254_s20, 3  ;;  %p269_p10 = scmp.eq.s32.totalorder (!%p197_p8), %s1254_s20, 0 }
  0x16   : > { %200 = sbr.rel (%p197_p8) target bundleno = 575 (0x23f), region = 32 }
  0x1b   : > { %s239_s23 = scalar_select %p238_p9, %s1254_s20, 3  ;;  %v1265_v0 = vmov (%p269_p10), 0.0  }
  0x1c   : > { %273 = sbr.rel (!%p269_p10) target bundleno = 36 (0x24), region = 36  ;;  %274 = vst [vmem:[#allocation2 + $0x30] sm:$0xff] (%p269_p10), %v1265_v0  ;;  %275 = vst [vmem:[#allocation2] sm:$0xff] (%p269_p10), %v1265_v0 }
  0x1d   : > { %s1013_s24 = sshll.u32 %s239_s23, 6  ;;  %276 = vst [vmem:[#allocation2 + $0x58] sm:$0xff] (%p269_p10), %v1265_v0  ;;  %277 = vst [vmem:[#allocation2 + $0x18] sm:$0xff] (%p269_p10), %v1265_v0 }
  0x1e   : > { %s1320_s27 = scalar_lea.vmem %s1403_s1, %s1013_s24  ;;  %s1325_s30 = scalar_lea.vmem %s1405_s3, %s1013_s24  ;;  %278 = vst [vmem:[#allocation2 + $0x50] sm:$0xff] (%p269_p10), %v1265_v0  ;;  %279 = vst [vmem:[#allocation2 + $0x68] sm:$0xff] (%p269_p10), %v1265_v0 }
  0x1f   : > { %280 = vst [vmem:[#allocation2 + $0x8] sm:$0xff] (%p269_p10), %v1265_v0  ;;  %281 = vst [vmem:[#allocation2 + $0x48] sm:$0xff] (%p269_p10), %v1265_v0 }
  0x20   : > { %282 = vst [vmem:[#allocation2 + $0x40] sm:$0xff] (%p269_p10), %v1265_v0  ;;  %283 = vst [vmem:[#allocation2 + $0x20] sm:$0xff] (%p269_p10), %v1265_v0 }
  0x21   : > { %284 = vst [vmem:[#allocation2 + $0x10] sm:$0xff] %v1265_v0  ;;  %285 = vst [vmem:[#allocation2 + $0x38] sm:$0xff] %v1265_v0 }
  0x22   : > { %286 = vst [vmem:[#allocation2 + $0x60] sm:$0xff] %v1265_v0  ;;  %287 = vst [vmem:[#allocation2 + $0x70] sm:$0xff] %v1265_v0 }
  0x23   : > { %288 = vst [vmem:[#allocation2 + $0x78] sm:$0xff] %v1265_v0  ;;  %289 = vst [vmem:[#allocation2 + $0x28] sm:$0xff] %v1265_v0 }
  0x24 PF: > { %s292_s5 = sld [smem:[#allocation4 + %s1254_s20]] }
  0x2a   : > { %p967_p11 = scmp.le.s32.totalorder %s292_s5, 0 }
  0x2c   : > { %296 = sbr.rel (%p967_p11) target bundleno = 563 (0x233), region = 40 }
  0x31   : > { %v1202_v1 = vld [vmem:[%s1325_s30 + $0x38] sm:$0xff]   ;;  %v1203_v2 = vld [vmem:[%s1325_s30 + $0x30] sm:$0xff]   ;;  %v1204_v3 = vld [vmem:[%s1325_s30 + $0x28] sm:$0xff]  }
  0x32   : > { %1112 = vmatprep.subr.bf16.mxu0 %v1202_v1  ;;  %v1205_v4 = vld [vmem:[%s1325_s30 + $0x20] sm:$0xff]   ;;  %v1206_v6 = vld [vmem:[%s1325_s30 + $0x18] sm:$0xff]   ;;  %v1207_v7 = vld [vmem:[%s1325_s30 + $0x10] sm:$0xff]  }
  0x33   : > { %1113 = vmatpush3.bf16.msra.mxu0 %v1202_v1  ;;  %v1210_v5 = vld [vmem:[%s1404_s2] sm:$0xff]   ;;  %v1208_v8 = vld [vmem:[%s1325_s30 + $0x8] sm:$0xff]   ;;  %v1212_v11 = vld [vmem:[%s1404_s2 + $0x10] sm:$0xff]  }
  0x34   : > { %1114 = vmatprep.subr.bf16.mxu0 %v1203_v2  ;;  %1128 = vmatprep.mubr.bf16.mxu0 %v1210_v5  ;;  %v1209_v9 = vld [vmem:[%s1325_s30] sm:$0xff]   ;;  %v1211_v10 = vld [vmem:[%s1404_s2 + $0x8] sm:$0xff]   ;;  %v1213_v12 = vld [vmem:[%s1404_s2 + $0x18] sm:$0xff]  }
  0x35   : > { %v1214_v13 = vld [vmem:[%s1404_s2 + $0x20] sm:$0xff]   ;;  %v1215_v14 = vld [vmem:[%s1404_s2 + $0x28] sm:$0xff]   ;;  %v1216_v15 = vld [vmem:[%s1404_s2 + $0x30] sm:$0xff]  }
  0x36   : > { %v1217_v16 = vld [vmem:[%s1404_s2 + $0x38] sm:$0xff]   ;;  %v1218_v17 = vld [vmem:[%s1320_s27] sm:$0xff]   ;;  %v1219_v42 = vld [vmem:[%s1320_s27 + $0x8] sm:$0xff]  }
  0x37   : > { %1115 = vmatpush3.bf16.msra.mxu0 %v1203_v2  ;;  %1160 = vmatprep.mubr.bf16.mxu1 %v1218_v17  ;;  %v1220_v43 = vld [vmem:[%s1320_s27 + $0x10] sm:$0xff]   ;;  %v1221_v44 = vld [vmem:[%s1320_s27 + $0x18] sm:$0xff]   ;;  %v1222_v45 = vld [vmem:[%s1320_s27 + $0x20] sm:$0xff]  }
  0x38   : > { %1116 = vmatprep.subr.bf16.mxu0 %v1204_v3  ;;  %v1223_v46 = vld [vmem:[%s1320_s27 + $0x28] sm:$0xff]   ;;  %v1224_v47 = vld [vmem:[%s1320_s27 + $0x30] sm:$0xff]   ;;  %v1225_v48 = vld [vmem:[%s1320_s27 + $0x38] sm:$0xff]  }
  0x39   : > { %v524_v49 = vld [vmem:[#allocation2 + $0x58] sm:$0xff]  ;;  %v522_v51 = vld [vmem:[#allocation2 + $0x30] sm:$0xff]  ;;  %v523_v57 = vld [vmem:[#allocation2] sm:$0xff] }
  0x3a   : > { %v525_v54 = vld [vmem:[#allocation2 + $0x18] sm:$0xff]  ;;  %v528_v60 = vld [vmem:[#allocation2 + $0x8] sm:$0xff]  ;;  %v526_v63 = vld [vmem:[#allocation2 + $0x50] sm:$0xff] }
  0x3b   : > { %1117 = vmatpush3.bf16.msra.mxu0 %v1204_v3  ;;  %v529_v2 = vld [vmem:[#allocation2 + $0x48] sm:$0xff]  ;;  %v531_v17 = vld [vmem:[#allocation2 + $0x20] sm:$0xff] }
  0x3c   : > { %1118 = vmatprep.subr.bf16.mxu0 %v1205_v4  ;;  %v527_v5 = vld [vmem:[#allocation2 + $0x68] sm:$0xff] }
  0x3f   : > { %1119 = vmatpush3.bf16.msra.mxu0 %v1205_v4 }
  0x40   : > { %1120 = vmatprep.subr.bf16.mxu0 %v1206_v6 }
  0x43   : > { %1121 = vmatpush3.bf16.msra.mxu0 %v1206_v6 }
  0x44   : > { %1122 = vmatprep.subr.bf16.mxu0 %v1207_v7 }
  0x47   : > { %1123 = vmatpush3.bf16.msra.mxu0 %v1207_v7 }
  0x48   : > { %1124 = vmatprep.subr.bf16.mxu0 %v1208_v8 }
  0x4b   : > { %1125 = vmatpush3.bf16.msra.mxu0 %v1208_v8  ;;  %v532_v8 = vld [vmem:[#allocation2 + $0x10] sm:$0xff] }
  0x4c   : > { %1126 = vmatprep.subr.bf16.mxu0 %v1209_v9 }
  0x4f   : > { %1127 = vmatpush3.bf16.msra.mxu0 %v1209_v9 }
  0x52   : > { %1129 = vmatmul.mubr.bf16.vlgmr.msra.gmra.mxu0 %v1211_v10 }
  0x53   : > { %1132 = vmatprep.mubr.bf16.mxu0 %v1212_v11  ;;  %v530_v11 = vld [vmem:[#allocation2 + $0x40] sm:$0xff] }
  0x5a   : > { %1133 = vmatmul.mubr.bf16.gmra.mxu0 %v1213_v12 }
  0x5b   : > { %1136 = vmatprep.mubr.bf16.mxu0 %v1214_v13 }
  0x62   : > { %1137 = vmatmul.mubr.bf16.gmra.mxu0 %v1215_v14  ;;  %v533_v14 = vld [vmem:[#allocation2 + $0x38] sm:$0xff] }
  0x63   : > { %1140 = vmatprep.mubr.bf16.mxu0 %v1216_v15 }
  0x6a   : > { %1141 = vmatmul.mubr.bf16.gmra.mxu0 %v1217_v16 }
 0x112   : > { %v1130_v18 = vpop.f32.mrf.mxu0 }
 0x114   : > { %v459_v19 = vpop.f32.mrf.mxu0 }
 0x116   : > { %v1131_v20 = vpop.f32.mrf.mxu0 }
 0x117   : > { %v555_v40 = vpack.c.bf16 %v1131_v20, %v1130_v18  ;;  %v536_v20 = vld [vmem:[#allocation2 + $0x78] sm:$0xff] }
 0x118   : > { %v462_v21 = vpop.f32.mrf.mxu0 }
 0x119   : > { %v554_v41 = vpack.c.bf16 %v462_v21, %v459_v19 }
 0x11a   : > { %v1134_v22 = vpop.f32.mrf.mxu0 }
 0x11c   : > { %v475_v23 = vpop.f32.mrf.mxu0 }
 0x11e   : > { %v1135_v24 = vpop.f32.mrf.mxu0 }
 0x11f   : > { %v557_v38 = vpack.c.bf16 %v1135_v24, %v1134_v22 }
 0x120   : > { %v478_v25 = vpop.f32.mrf.mxu0 }
 0x121   : > { %v556_v39 = vpack.c.bf16 %v478_v25, %v475_v23  ;;  %v534_v23 = vld [vmem:[#allocation2 + $0x60] sm:$0xff] }
 0x122   : > { %v1138_v26 = vpop.f32.mrf.mxu0 }
 0x124   : > { %v491_v27 = vpop.f32.mrf.mxu0 }
 0x126   : > { %v1139_v28 = vpop.f32.mrf.mxu0 }
 0x127   : > { %v559_v36 = vpack.c.bf16 %v1139_v28, %v1138_v26  ;;  %v537_v26 = vld [vmem:[#allocation2 + $0x28] sm:$0xff] }
 0x128   : > { %v494_v29 = vpop.f32.mrf.mxu0 }
 0x129   : > { %v558_v37 = vpack.c.bf16 %v494_v29, %v491_v27  ;;  %v535_v29 = vld [vmem:[#allocation2 + $0x70] sm:$0xff] }
 0x12a   : > { %v1142_v30 = vpop.f32.mrf.mxu0 }
 0x12c   : > { %v507_v31 = vpop.f32.mrf.mxu0 }
 0x12e   : > { %v1143_v32 = vpop.f32.mrf.mxu0 }
 0x12f   : > { %v561_v33 = vpack.c.bf16 %v1143_v32, %v1142_v30 }
 0x130   : > { %v510_v34 = vpop.f32.mrf.mxu0 }
 0x131   : > { %v560_v35 = vpack.c.bf16 %v510_v34, %v507_v31  ;;  %1144 = vmatprep.subr.bf16.mxu1 %v561_v33 }
 0x132   : > { %1145 = vmatpush3.bf16.msra.mxu1 %v561_v33 }
 0x133   : > { %1146 = vmatprep.subr.bf16.mxu1 %v560_v35 }
 0x136   : > { %1147 = vmatpush3.bf16.msra.mxu1 %v560_v35 }
 0x137   : > { %1148 = vmatprep.subr.bf16.mxu1 %v559_v36 }
 0x13a   : > { %1149 = vmatpush3.bf16.msra.mxu1 %v559_v36 }
 0x13b   : > { %1150 = vmatprep.subr.bf16.mxu1 %v558_v37 }
 0x13e   : > { %1151 = vmatpush3.bf16.msra.mxu1 %v558_v37 }
 0x13f   : > { %1152 = vmatprep.subr.bf16.mxu1 %v557_v38 }
 0x142   : > { %1153 = vmatpush3.bf16.msra.mxu1 %v557_v38 }
 0x143   : > { %1154 = vmatprep.subr.bf16.mxu1 %v556_v39 }
 0x146   : > { %1155 = vmatpush3.bf16.msra.mxu1 %v556_v39 }
 0x147   : > { %1156 = vmatprep.subr.bf16.mxu1 %v555_v40 }
 0x14a   : > { %1157 = vmatpush3.bf16.msra.mxu1 %v555_v40 }
 0x14b   : > { %1158 = vmatprep.subr.bf16.mxu1 %v554_v41 }
 0x14e   : > { %1159 = vmatpush3.bf16.msra.mxu1 %v554_v41 }
 0x151   : > { %1161 = vmatmul.mubr.bf16.vlgmr.msra.gmra.mxu1 %v1219_v42 }
 0x152   : > { %1164 = vmatprep.mubr.bf16.mxu1 %v1220_v43 }
 0x159   : > { %1165 = vmatmul.mubr.bf16.gmra.mxu1 %v1221_v44 }
 0x15a   : > { %1168 = vmatprep.mubr.bf16.mxu1 %v1222_v45 }
 0x161   : > { %1169 = vmatmul.mubr.bf16.gmra.mxu1 %v1223_v46 }
 0x162   : > { %1172 = vmatprep.mubr.bf16.mxu1 %v1224_v47 }
 0x169   : > { %1173 = vmatmul.mubr.bf16.gmra.mxu1 %v1225_v48 }
 0x211   : > { %v1162_v50 = vpop.f32.mrf.mxu1 }
 0x212   : > { %v709_v52 = vadd.f32 %v1162_v50, %v524_v49 }
 0x213   : > { %v644_v53 = vpop.f32.mrf.mxu1 }
 0x214   : > { %725 = vst [vmem:[#allocation2 + $0x58] sm:$0xff] %v709_v52  ;;  %v707_v55 = vadd.f32 %v644_v53, %v522_v51 }
 0x215   : > { %v1163_v56 = vpop.f32.mrf.mxu1 }
 0x216   : > { %723 = vst [vmem:[#allocation2 + $0x30] sm:$0xff] %v707_v55  ;;  %v710_v58 = vadd.f32 %v1163_v56, %v525_v54 }
 0x217   : > { %v647_v59 = vpop.f32.mrf.mxu1 }
 0x218   : > { %726 = vst [vmem:[#allocation2 + $0x18] sm:$0xff] %v710_v58  ;;  %v708_v61 = vadd.f32 %v647_v59, %v523_v57 }
 0x219   : > { %v1166_v62 = vpop.f32.mrf.mxu1 }
 0x21a   : > { %724 = vst [vmem:[#allocation2] sm:$0xff] %v708_v61  ;;  %v713_v0 = vadd.f32 %v1166_v62, %v528_v60 }
 0x21b   : > { %v660_v1 = vpop.f32.mrf.mxu1 }
 0x21c   : > { %729 = vst [vmem:[#allocation2 + $0x8] sm:$0xff] %v713_v0  ;;  %v711_v3 = vadd.f32 %v660_v1, %v526_v63 }
 0x21d   : > { %v1167_v4 = vpop.f32.mrf.mxu1 }
 0x21e   : > { %727 = vst [vmem:[#allocation2 + $0x50] sm:$0xff] %v711_v3  ;;  %v714_v6 = vadd.f32 %v1167_v4, %v529_v2 }
 0x21f   : > { %v663_v7 = vpop.f32.mrf.mxu1 }
 0x220   : > { %730 = vst [vmem:[#allocation2 + $0x48] sm:$0xff] %v714_v6  ;;  %v712_v9 = vadd.f32 %v663_v7, %v527_v5 }
 0x221   : > { %v1170_v10 = vpop.f32.mrf.mxu1 }
 0x222   : > { %728 = vst [vmem:[#allocation2 + $0x68] sm:$0xff] %v712_v9  ;;  %v717_v12 = vadd.f32 %v1170_v10, %v532_v8 }
 0x223   : > { %v676_v13 = vpop.f32.mrf.mxu1 }
 0x224   : > { %733 = vst [vmem:[#allocation2 + $0x10] sm:$0xff] %v717_v12  ;;  %v715_v15 = vadd.f32 %v676_v13, %v530_v11 }
 0x225   : > { %v1171_v16 = vpop.f32.mrf.mxu1 }
 0x226   : > { %731 = vst [vmem:[#allocation2 + $0x40] sm:$0xff] %v715_v15  ;;  %v718_v18 = vadd.f32 %v1171_v16, %v533_v14 }
 0x227   : > { %v679_v19 = vpop.f32.mrf.mxu1 }
 0x228   : > { %734 = vst [vmem:[#allocation2 + $0x38] sm:$0xff] %v718_v18  ;;  %v716_v21 = vadd.f32 %v679_v19, %v531_v17 }
 0x229   : > { %v1174_v22 = vpop.f32.mrf.mxu1 }
 0x22a   : > { %732 = vst [vmem:[#allocation2 + $0x20] sm:$0xff] %v716_v21  ;;  %v721_v24 = vadd.f32 %v1174_v22, %v536_v20 }
 0x22b   : > { %v692_v25 = vpop.f32.mrf.mxu1 }
 0x22c   : > { %737 = vst [vmem:[#allocation2 + $0x78] sm:$0xff] %v721_v24  ;;  %v719_v27 = vadd.f32 %v692_v25, %v534_v23 }
 0x22d   : > { %v1175_v28 = vpop.f32.mrf.mxu1 }
 0x22e   : > { %735 = vst [vmem:[#allocation2 + $0x60] sm:$0xff] %v719_v27  ;;  %v722_v30 = vadd.f32 %v1175_v28, %v537_v26 }
 0x22f   : > { %v695_v31 = vpop.f32.mrf.mxu1 }
 0x230   : > { %738 = vst [vmem:[#allocation2 + $0x28] sm:$0xff] %v722_v30  ;;  %v720_v32 = vadd.f32 %v695_v31, %v535_v29 }
 0x232   : > { %736 = vst [vmem:[#allocation2 + $0x70] sm:$0xff] %v720_v32 }
 0x233 PF: > { %p739_p12 = scmp.eq.s32.totalorder %s1254_s20, 3 }
 0x234   : > { %v744_v33 = vld [vmem:[#allocation2 + $0x30] sm:$0xff] (%p739_p12)  ;;  %v745_v34 = vld [vmem:[#allocation2] sm:$0xff] (%p739_p12)  ;;  %v746_v35 = vld [vmem:[#allocation2 + $0x58] sm:$0xff] (%p739_p12) }
 0x235   : > { %743 = sbr.rel (!%p739_p12) target bundleno = 575 (0x23f), region = 44  ;;  %v760_v36 = vmax.f32 (%p739_p12), %v744_v33, 0.0  ;;  %v761_v37 = vmax.f32 (%p739_p12), %v745_v34, 0.0  ;;  %v747_v38 = vld [vmem:[#allocation2 + $0x18] sm:$0xff] (%p739_p12)  ;;  %v762_v39 = vmax.f32 (%p739_p12), %v746_v35, 0.0  ;;  %v748_v40 = vld [vmem:[#allocation2 + $0x50] sm:$0xff] (%p739_p12) }
 0x236   : > { %v749_v41 = vld [vmem:[#allocation2 + $0x68] sm:$0xff] (%p739_p12)  ;;  %v763_v42 = vmax.f32 (%p739_p12), %v747_v38, 0.0  ;;  %v764_v43 = vmax.f32 (%p739_p12), %v748_v40, 0.0  ;;  %v752_v47 = vld [vmem:[#allocation2 + $0x40] sm:$0xff] (%p739_p12)  ;;  %v754_v53 = vld [vmem:[#allocation2 + $0x10] sm:$0xff] (%p739_p12) }
 0x237   : > { %v765_v44 = vmax.f32 (%p739_p12), %v749_v41, 0.0  ;;  %v750_v45 = vld [vmem:[#allocation2 + $0x8] sm:$0xff] (%p739_p12)  ;;  %v1036_v48 = vpack.c.bf16 (%p739_p12), %v761_v37, %v760_v36  ;;  %v753_v51 = vld [vmem:[#allocation2 + $0x20] sm:$0xff] (%p739_p12)  ;;  %v768_v52 = vmax.f32 (%p739_p12), %v752_v47, 0.0  ;;  %v755_v54 = vld [vmem:[#allocation2 + $0x38] sm:$0xff] (%p739_p12)  ;;  %v770_v58 = vmax.f32 (%p739_p12), %v754_v53, 0.0 }
 0x238   : > { %v751_v46 = vld [vmem:[#allocation2 + $0x48] sm:$0xff] (%p739_p12)  ;;  %v766_v49 = vmax.f32 (%p739_p12), %v750_v45, 0.0  ;;  %v1041_v55 = vpack.c.bf16 (%p739_p12), %v763_v42, %v762_v39  ;;  %v769_v57 = vmax.f32 (%p739_p12), %v753_v51, 0.0  ;;  %v756_v59 = vld [vmem:[#allocation2 + $0x60] sm:$0xff] (%p739_p12)  ;;  %v758_v61 = vld [vmem:[#allocation2 + $0x78] sm:$0xff] (%p739_p12)  ;;  %v771_v63 = vmax.f32 (%p739_p12), %v755_v54, 0.0 }
 0x239   : > { %v767_v50 = vmax.f32 (%p739_p12), %v751_v46, 0.0  ;;  %v1046_v56 = vpack.c.bf16 (%p739_p12), %v765_v44, %v764_v43  ;;  %v757_v60 = vld [vmem:[#allocation2 + $0x70] sm:$0xff] (%p739_p12)  ;;  %1037 = vst [vmem:[%s1406_s4] sm:$0xff] (%p739_p12), %v1036_v48   ;;  %v772_v0 = vmax.f32 (%p739_p12), %v756_v59, 0.0  ;;  %v759_v2 = vld [vmem:[#allocation2 + $0x28] sm:$0xff] (%p739_p12)  ;;  %v774_v4 = vmax.f32 (%p739_p12), %v758_v61, 0.0 }
 0x23a   : > { %v773_v1 = vmax.f32 %v757_v60, 0.0  ;;  %1073 = vst [vmem:[%s1406_s4 + $0x8] sm:$0xff] %v1041_v55   ;;  %v1056_v3 = vpack.c.bf16 %v769_v57, %v768_v52  ;;  %v775_v5 = vmax.f32 %v759_v2, 0.0  ;;  %v1061_v6 = vpack.c.bf16 %v771_v63, %v770_v58 }
 0x23b   : > { %v1051_v62 = vpack.c.bf16 %v767_v50, %v766_v49  ;;  %1074 = vst [vmem:[%s1406_s4 + $0x10] sm:$0xff] %v1046_v56  }
 0x23c   : > { %v1066_v7 = vpack.c.bf16 %v773_v1, %v772_v0  ;;  %1076 = vst [vmem:[%s1406_s4 + $0x20] sm:$0xff] %v1056_v3   ;;  %v1071_v8 = vpack.c.bf16 %v775_v5, %v774_v4  ;;  %1077 = vst [vmem:[%s1406_s4 + $0x28] sm:$0xff] %v1061_v6  }
 0x23d   : > { %1075 = vst [vmem:[%s1406_s4 + $0x18] sm:$0xff] %v1051_v62  }
 0x23e   : > { %1078 = vst [vmem:[%s1406_s4 + $0x30] sm:$0xff] %v1066_v7   ;;  %1079 = vst [vmem:[%s1406_s4 + $0x38] sm:$0xff] %v1071_v8  }
 0x23f PF: > { %s20_s22 = sadd.s32 1, %s1262_s22   ;;  %s1407_s20 = smov %s1258_s21 }
 0x240   : > { %p17_p13 = scmp.ge.s32.totalorder %s20_s22, 6   ;;  %s1408_s21 = smov %s1410_s0 }
 0x242   :  { %19 = sbr.rel (!%p17_p13) target bundleno = 17 (0x11), region = 80 }

// kernel: rgcn_forward.5
= control target key start
LH: loop header
LB: loop body
LE: loop exit
PB: predicated region body
PF: predicated region fallthrough
CT: control target
= control target key end

     0   :  { %s1598_s0 = inlined_call_operand.vmem [shape: s32[4], index: 0, kind: input, shape index: {}]   ;;  %s1599_s1 = inlined_call_operand.vmem [shape: bf16[4,128,128], index: 1, kind: input, shape index: {}]   ;;  %s1600_s2 = inlined_call_operand.vmem [shape: bf16[128,128], index: 2, kind: input, shape index: {}]   ;;  %s1601_s3 = inlined_call_operand.vmem [shape: bf16[4,128,128], index: 3, kind: input, shape index: {}]   ;;  %s1602_s4 = inlined_call_operand.vmem [shape: f32[128,128], index: 4, kind: output, shape index: {}]  }
   0x1   :  { %s9_s17 = sshll.u32 %s1598_s0, 4  ;;  %s10_s17 = int_to_ptr.vmem [resolvable:$true] %s9_s17 }
   0x2   :  { %s1294_s18 = scalar_lea.vmem %s10_s17, 16  ;;  %p1299_p1 = scmp.lt.s32.totalorder %s10_s17, %s10_s17 }
   0x3   :  { %p1295_p0 = scmp.ne.s32.totalorder %s10_s17, %s1294_s18  ;;  %p1300_p2 = scmp.lt.s32.totalorder %s1294_s18, %s1294_s18 }
   0x5   :  { %p1301_p3 = por %p1300_p2, %p1299_p1 }
   0x7   :  { %p1302_p4 = pnand %p1301_p3, %p1295_p0 }
   0x9   :  { %1305 = shalt.err (!%p1302_p4)  }
   0xa   :  { %s1332_s19 = smov [#allocation4]  }
   0xb   :  { %12 = dma.vmem_to_smem %s10_s17, 16, %s1332_s19, [#allocation3] }
   0xc   :  { %1318 = dma.done.wait [#allocation3], 16 }
   0xd   :  { %1319 = vsyncadd [#allocation3], 4294967280 }
   0xe   :  { %14 = sfence }
   0xf   :  { %s1362_s20 = smov 0   ;;  %s1364_s21 = smov 0  }
  0x10   :  { %s1366_s22 = smov 0  }
  0x11 LB: > { %s32_s0 = sadd.s32 1, %s1326_s21  ;;  %p1044_p5 = scmp.ge.s32.totalorder %s1330_s22, 1  ;;  %s1330_s22 = sphi %s1366_s22, %s20_s22   ;;  %s1326_s21 = sphi %s1364_s21, %s1604_s21   ;;  %s1322_s20 = sphi %s1362_s20, %s1603_s20  }
  0x12   : > { %p33_p6 = scmp.ge.s32.totalorder %s32_s0, 4  ;;  %p196_p7 = scmp.lt.s32.totalorder %s1330_s22, 5 }
  0x14   : > { %s1606_s0 = smov (%p33_p6, %s32_s0), 0  ;;  %p197_p8 = pnand %p1044_p5, %p196_p7 }
  0x15   : > { %p238_p9 = scmp.lt.s32.totalorder (!%p197_p8), %s1322_s20, 3  ;;  %p269_p10 = scmp.eq.s32.totalorder (!%p197_p8), %s1322_s20, 0 }
  0x16   : > { %200 = sbr.rel (%p197_p8) target bundleno = 913 (0x391), region = 32 }
  0x1b   : > { %s239_s23 = scalar_select %p238_p9, %s1322_s20, 3  ;;  %v1333_v0 = vmov (%p269_p10), 0.0  }
  0x1c   : > { %273 = sbr.rel (!%p269_p10) target bundleno = 36 (0x24), region = 36  ;;  %274 = vst [vmem:[#allocation2 + $0x30] sm:$0xff] (%p269_p10), %v1333_v0  ;;  %275 = vst [vmem:[#allocation2] sm:$0xff] (%p269_p10), %v1333_v0 }
  0x1d   : > { %s1080_s24 = sshll.u32 %s239_s23, 6  ;;  %276 = vst [vmem:[#allocation2 + $0x58] sm:$0xff] (%p269_p10), %v1333_v0  ;;  %277 = vst [vmem:[#allocation2 + $0x18] sm:$0xff] (%p269_p10), %v1333_v0 }
  0x1e   : > { %s1388_s27 = scalar_lea.vmem %s1599_s1, %s1080_s24  ;;  %s1393_s30 = scalar_lea.vmem %s1601_s3, %s1080_s24  ;;  %278 = vst [vmem:[#allocation2 + $0x50] sm:$0xff] (%p269_p10), %v1333_v0  ;;  %279 = vst [vmem:[#allocation2 + $0x68] sm:$0xff] (%p269_p10), %v1333_v0 }
  0x1f   : > { %280 = vst [vmem:[#allocation2 + $0x8] sm:$0xff] (%p269_p10), %v1333_v0  ;;  %281 = vst [vmem:[#allocation2 + $0x48] sm:$0xff] (%p269_p10), %v1333_v0 }
  0x20   : > { %282 = vst [vmem:[#allocation2 + $0x40] sm:$0xff] (%p269_p10), %v1333_v0  ;;  %283 = vst [vmem:[#allocation2 + $0x20] sm:$0xff] (%p269_p10), %v1333_v0 }
  0x21   : > { %284 = vst [vmem:[#allocation2 + $0x10] sm:$0xff] %v1333_v0  ;;  %285 = vst [vmem:[#allocation2 + $0x38] sm:$0xff] %v1333_v0 }
  0x22   : > { %286 = vst [vmem:[#allocation2 + $0x60] sm:$0xff] %v1333_v0  ;;  %287 = vst [vmem:[#allocation2 + $0x70] sm:$0xff] %v1333_v0 }
  0x23   : > { %288 = vst [vmem:[#allocation2 + $0x78] sm:$0xff] %v1333_v0  ;;  %289 = vst [vmem:[#allocation2 + $0x28] sm:$0xff] %v1333_v0 }
  0x24 PF: > { %s292_s5 = sld [smem:[#allocation4 + %s1322_s20]] }
  0x2a   : > { %p1050_p11 = scmp.le.s32.totalorder %s292_s5, 0 }
  0x2c   : > { %296 = sbr.rel (%p1050_p11) target bundleno = 563 (0x233), region = 40 }
  0x31   : > { %v1206_v1 = vld [vmem:[%s1393_s30 + $0x38] sm:$0xff]   ;;  %v1207_v2 = vld [vmem:[%s1393_s30 + $0x30] sm:$0xff]   ;;  %v1208_v3 = vld [vmem:[%s1393_s30 + $0x28] sm:$0xff]  }
  0x32   : > { %1116 = vmatprep.subr.bf16.mxu0 %v1206_v1  ;;  %v1209_v4 = vld [vmem:[%s1393_s30 + $0x20] sm:$0xff]   ;;  %v1210_v6 = vld [vmem:[%s1393_s30 + $0x18] sm:$0xff]   ;;  %v1211_v7 = vld [vmem:[%s1393_s30 + $0x10] sm:$0xff]  }
  0x33   : > { %1117 = vmatpush3.bf16.msra.mxu0 %v1206_v1  ;;  %v1214_v5 = vld [vmem:[%s1600_s2] sm:$0xff]   ;;  %v1212_v8 = vld [vmem:[%s1393_s30 + $0x8] sm:$0xff]   ;;  %v1216_v11 = vld [vmem:[%s1600_s2 + $0x10] sm:$0xff]  }
  0x34   : > { %1118 = vmatprep.subr.bf16.mxu0 %v1207_v2  ;;  %1132 = vmatprep.mubr.bf16.mxu0 %v1214_v5  ;;  %v1213_v9 = vld [vmem:[%s1393_s30] sm:$0xff]   ;;  %v1215_v10 = vld [vmem:[%s1600_s2 + $0x8] sm:$0xff]   ;;  %v1217_v12 = vld [vmem:[%s1600_s2 + $0x18] sm:$0xff]  }
  0x35   : > { %v1218_v13 = vld [vmem:[%s1600_s2 + $0x20] sm:$0xff]   ;;  %v1219_v14 = vld [vmem:[%s1600_s2 + $0x28] sm:$0xff]   ;;  %v1220_v15 = vld [vmem:[%s1600_s2 + $0x30] sm:$0xff]  }
  0x36   : > { %v1221_v16 = vld [vmem:[%s1600_s2 + $0x38] sm:$0xff]   ;;  %v1222_v17 = vld [vmem:[%s1388_s27] sm:$0xff]   ;;  %v1223_v42 = vld [vmem:[%s1388_s27 + $0x8] sm:$0xff]  }
  0x37   : > { %1119 = vmatpush3.bf16.msra.mxu0 %v1207_v2  ;;  %1164 = vmatprep.mubr.bf16.mxu1 %v1222_v17  ;;  %v1224_v43 = vld [vmem:[%s1388_s27 + $0x10] sm:$0xff]   ;;  %v1225_v44 = vld [vmem:[%s1388_s27 + $0x18] sm:$0xff]   ;;  %v1226_v45 = vld [vmem:[%s1388_s27 + $0x20] sm:$0xff]  }
  0x38   : > { %1120 = vmatprep.subr.bf16.mxu0 %v1208_v3  ;;  %v1227_v46 = vld [vmem:[%s1388_s27 + $0x28] sm:$0xff]   ;;  %v1228_v47 = vld [vmem:[%s1388_s27 + $0x30] sm:$0xff]   ;;  %v1229_v48 = vld [vmem:[%s1388_s27 + $0x38] sm:$0xff]  }
  0x39   : > { %v524_v49 = vld [vmem:[#allocation2 + $0x58] sm:$0xff]  ;;  %v522_v51 = vld [vmem:[#allocation2 + $0x30] sm:$0xff]  ;;  %v523_v57 = vld [vmem:[#allocation2] sm:$0xff] }
  0x3a   : > { %v525_v54 = vld [vmem:[#allocation2 + $0x18] sm:$0xff]  ;;  %v528_v60 = vld [vmem:[#allocation2 + $0x8] sm:$0xff]  ;;  %v526_v63 = vld [vmem:[#allocation2 + $0x50] sm:$0xff] }
  0x3b   : > { %1121 = vmatpush3.bf16.msra.mxu0 %v1208_v3  ;;  %v529_v2 = vld [vmem:[#allocation2 + $0x48] sm:$0xff]  ;;  %v531_v17 = vld [vmem:[#allocation2 + $0x20] sm:$0xff] }
  0x3c   : > { %1122 = vmatprep.subr.bf16.mxu0 %v1209_v4  ;;  %v527_v5 = vld [vmem:[#allocation2 + $0x68] sm:$0xff] }
  0x3f   : > { %1123 = vmatpush3.bf16.msra.mxu0 %v1209_v4 }
  0x40   : > { %1124 = vmatprep.subr.bf16.mxu0 %v1210_v6 }
  0x43   : > { %1125 = vmatpush3.bf16.msra.mxu0 %v1210_v6 }
  0x44   : > { %1126 = vmatprep.subr.bf16.mxu0 %v1211_v7 }
  0x47   : > { %1127 = vmatpush3.bf16.msra.mxu0 %v1211_v7 }
  0x48   : > { %1128 = vmatprep.subr.bf16.mxu0 %v1212_v8 }
  0x4b   : > { %1129 = vmatpush3.bf16.msra.mxu0 %v1212_v8  ;;  %v532_v8 = vld [vmem:[#allocation2 + $0x10] sm:$0xff] }
  0x4c   : > { %1130 = vmatprep.subr.bf16.mxu0 %v1213_v9 }
  0x4f   : > { %1131 = vmatpush3.bf16.msra.mxu0 %v1213_v9 }
  0x52   : > { %1133 = vmatmul.mubr.bf16.vlgmr.msra.gmra.mxu0 %v1215_v10 }
  0x53   : > { %1136 = vmatprep.mubr.bf16.mxu0 %v1216_v11  ;;  %v530_v11 = vld [vmem:[#allocation2 + $0x40] sm:$0xff] }
  0x5a   : > { %1137 = vmatmul.mubr.bf16.gmra.mxu0 %v1217_v12 }
  0x5b   : > { %1140 = vmatprep.mubr.bf16.mxu0 %v1218_v13 }
  0x62   : > { %1141 = vmatmul.mubr.bf16.gmra.mxu0 %v1219_v14  ;;  %v533_v14 = vld [vmem:[#allocation2 + $0x38] sm:$0xff] }
  0x63   : > { %1144 = vmatprep.mubr.bf16.mxu0 %v1220_v15 }
  0x6a   : > { %1145 = vmatmul.mubr.bf16.gmra.mxu0 %v1221_v16 }
 0x112   : > { %v1134_v18 = vpop.f32.mrf.mxu0 }
 0x114   : > { %v459_v19 = vpop.f32.mrf.mxu0 }
 0x116   : > { %v1135_v20 = vpop.f32.mrf.mxu0 }
 0x117   : > { %v555_v40 = vpack.c.bf16 %v1135_v20, %v1134_v18  ;;  %v536_v20 = vld [vmem:[#allocation2 + $0x78] sm:$0xff] }
 0x118   : > { %v462_v21 = vpop.f32.mrf.mxu0 }
 0x119   : > { %v554_v41 = vpack.c.bf16 %v462_v21, %v459_v19 }
 0x11a   : > { %v1138_v22 = vpop.f32.mrf.mxu0 }
 0x11c   : > { %v475_v23 = vpop.f32.mrf.mxu0 }
 0x11e   : > { %v1139_v24 = vpop.f32.mrf.mxu0 }
 0x11f   : > { %v557_v38 = vpack.c.bf16 %v1139_v24, %v1138_v22 }
 0x120   : > { %v478_v25 = vpop.f32.mrf.mxu0 }
 0x121   : > { %v556_v39 = vpack.c.bf16 %v478_v25, %v475_v23  ;;  %v534_v23 = vld [vmem:[#allocation2 + $0x60] sm:$0xff] }
 0x122   : > { %v1142_v26 = vpop.f32.mrf.mxu0 }
 0x124   : > { %v491_v27 = vpop.f32.mrf.mxu0 }
 0x126   : > { %v1143_v28 = vpop.f32.mrf.mxu0 }
 0x127   : > { %v559_v36 = vpack.c.bf16 %v1143_v28, %v1142_v26  ;;  %v537_v26 = vld [vmem:[#allocation2 + $0x28] sm:$0xff] }
 0x128   : > { %v494_v29 = vpop.f32.mrf.mxu0 }
 0x129   : > { %v558_v37 = vpack.c.bf16 %v494_v29, %v491_v27  ;;  %v535_v29 = vld [vmem:[#allocation2 + $0x70] sm:$0xff] }
 0x12a   : > { %v1146_v30 = vpop.f32.mrf.mxu0 }
 0x12c   : > { %v507_v31 = vpop.f32.mrf.mxu0 }
 0x12e   : > { %v1147_v32 = vpop.f32.mrf.mxu0 }
 0x12f   : > { %v561_v33 = vpack.c.bf16 %v1147_v32, %v1146_v30 }
 0x130   : > { %v510_v34 = vpop.f32.mrf.mxu0 }
 0x131   : > { %v560_v35 = vpack.c.bf16 %v510_v34, %v507_v31  ;;  %1148 = vmatprep.subr.bf16.mxu1 %v561_v33 }
 0x132   : > { %1149 = vmatpush3.bf16.msra.mxu1 %v561_v33 }
 0x133   : > { %1150 = vmatprep.subr.bf16.mxu1 %v560_v35 }
 0x136   : > { %1151 = vmatpush3.bf16.msra.mxu1 %v560_v35 }
 0x137   : > { %1152 = vmatprep.subr.bf16.mxu1 %v559_v36 }
 0x13a   : > { %1153 = vmatpush3.bf16.msra.mxu1 %v559_v36 }
 0x13b   : > { %1154 = vmatprep.subr.bf16.mxu1 %v558_v37 }
 0x13e   : > { %1155 = vmatpush3.bf16.msra.mxu1 %v558_v37 }
 0x13f   : > { %1156 = vmatprep.subr.bf16.mxu1 %v557_v38 }
 0x142   : > { %1157 = vmatpush3.bf16.msra.mxu1 %v557_v38 }
 0x143   : > { %1158 = vmatprep.subr.bf16.mxu1 %v556_v39 }
 0x146   : > { %1159 = vmatpush3.bf16.msra.mxu1 %v556_v39 }
 0x147   : > { %1160 = vmatprep.subr.bf16.mxu1 %v555_v40 }
 0x14a   : > { %1161 = vmatpush3.bf16.msra.mxu1 %v555_v40 }
 0x14b   : > { %1162 = vmatprep.subr.bf16.mxu1 %v554_v41 }
 0x14e   : > { %1163 = vmatpush3.bf16.msra.mxu1 %v554_v41 }
 0x151   : > { %1165 = vmatmul.mubr.bf16.vlgmr.msra.gmra.mxu1 %v1223_v42 }
 0x152   : > { %1168 = vmatprep.mubr.bf16.mxu1 %v1224_v43 }
 0x159   : > { %1169 = vmatmul.mubr.bf16.gmra.mxu1 %v1225_v44 }
 0x15a   : > { %1172 = vmatprep.mubr.bf16.mxu1 %v1226_v45 }
 0x161   : > { %1173 = vmatmul.mubr.bf16.gmra.mxu1 %v1227_v46 }
 0x162   : > { %1176 = vmatprep.mubr.bf16.mxu1 %v1228_v47 }
 0x169   : > { %1177 = vmatmul.mubr.bf16.gmra.mxu1 %v1229_v48 }
 0x211   : > { %v1166_v50 = vpop.f32.mrf.mxu1 }
 0x212   : > { %v709_v52 = vadd.f32 %v1166_v50, %v524_v49 }
 0x213   : > { %v644_v53 = vpop.f32.mrf.mxu1 }
 0x214   : > { %725 = vst [vmem:[#allocation2 + $0x58] sm:$0xff] %v709_v52  ;;  %v707_v55 = vadd.f32 %v644_v53, %v522_v51 }
 0x215   : > { %v1167_v56 = vpop.f32.mrf.mxu1 }
 0x216   : > { %723 = vst [vmem:[#allocation2 + $0x30] sm:$0xff] %v707_v55  ;;  %v710_v58 = vadd.f32 %v1167_v56, %v525_v54 }
 0x217   : > { %v647_v59 = vpop.f32.mrf.mxu1 }
 0x218   : > { %726 = vst [vmem:[#allocation2 + $0x18] sm:$0xff] %v710_v58  ;;  %v708_v61 = vadd.f32 %v647_v59, %v523_v57 }
 0x219   : > { %v1170_v62 = vpop.f32.mrf.mxu1 }
 0x21a   : > { %724 = vst [vmem:[#allocation2] sm:$0xff] %v708_v61  ;;  %v713_v0 = vadd.f32 %v1170_v62, %v528_v60 }
 0x21b   : > { %v660_v1 = vpop.f32.mrf.mxu1 }
 0x21c   : > { %729 = vst [vmem:[#allocation2 + $0x8] sm:$0xff] %v713_v0  ;;  %v711_v3 = vadd.f32 %v660_v1, %v526_v63 }
 0x21d   : > { %v1171_v4 = vpop.f32.mrf.mxu1 }
 0x21e   : > { %727 = vst [vmem:[#allocation2 + $0x50] sm:$0xff] %v711_v3  ;;  %v714_v6 = vadd.f32 %v1171_v4, %v529_v2 }
 0x21f   : > { %v663_v7 = vpop.f32.mrf.mxu1 }
 0x220   : > { %730 = vst [vmem:[#allocation2 + $0x48] sm:$0xff] %v714_v6  ;;  %v712_v9 = vadd.f32 %v663_v7, %v527_v5 }
 0x221   : > { %v1174_v10 = vpop.f32.mrf.mxu1 }
 0x222   : > { %728 = vst [vmem:[#allocation2 + $0x68] sm:$0xff] %v712_v9  ;;  %v717_v12 = vadd.f32 %v1174_v10, %v532_v8 }
 0x223   : > { %v676_v13 = vpop.f32.mrf.mxu1 }
 0x224   : > { %733 = vst [vmem:[#allocation2 + $0x10] sm:$0xff] %v717_v12  ;;  %v715_v15 = vadd.f32 %v676_v13, %v530_v11 }
 0x225   : > { %v1175_v16 = vpop.f32.mrf.mxu1 }
 0x226   : > { %731 = vst [vmem:[#allocation2 + $0x40] sm:$0xff] %v715_v15  ;;  %v718_v18 = vadd.f32 %v1175_v16, %v533_v14 }
 0x227   : > { %v679_v19 = vpop.f32.mrf.mxu1 }
 0x228   : > { %734 = vst [vmem:[#allocation2 + $0x38] sm:$0xff] %v718_v18  ;;  %v716_v21 = vadd.f32 %v679_v19, %v531_v17 }
 0x229   : > { %v1178_v22 = vpop.f32.mrf.mxu1 }
 0x22a   : > { %732 = vst [vmem:[#allocation2 + $0x20] sm:$0xff] %v716_v21  ;;  %v721_v24 = vadd.f32 %v1178_v22, %v536_v20 }
 0x22b   : > { %v692_v25 = vpop.f32.mrf.mxu1 }
 0x22c   : > { %737 = vst [vmem:[#allocation2 + $0x78] sm:$0xff] %v721_v24  ;;  %v719_v27 = vadd.f32 %v692_v25, %v534_v23 }
 0x22d   : > { %v1179_v28 = vpop.f32.mrf.mxu1 }
 0x22e   : > { %735 = vst [vmem:[#allocation2 + $0x60] sm:$0xff] %v719_v27  ;;  %v722_v30 = vadd.f32 %v1179_v28, %v537_v26 }
 0x22f   : > { %v695_v31 = vpop.f32.mrf.mxu1 }
 0x230   : > { %738 = vst [vmem:[#allocation2 + $0x28] sm:$0xff] %v722_v30  ;;  %v720_v32 = vadd.f32 %v695_v31, %v535_v29 }
 0x232   : > { %736 = vst [vmem:[#allocation2 + $0x70] sm:$0xff] %v720_v32 }
 0x233 PF: > { %p739_p12 = scmp.eq.s32.totalorder %s1322_s20, 3 }
 0x234   : > { %v760_v33 = vlaneseq (%p739_p12)  ;;  %v744_v34 = vld [vmem:[#allocation2 + $0x30] sm:$0xff] (%p739_p12)  ;;  %v746_v36 = vld [vmem:[#allocation2 + $0x58] sm:$0xff] (%p739_p12)  ;;  %v745_v37 = vld [vmem:[#allocation2] sm:$0xff] (%p739_p12) }
 0x235   : > { %743 = sbr.rel (!%p739_p12) target bundleno = 913 (0x391), region = 44  ;;  %v747_v38 = vld [vmem:[#allocation2 + $0x18] sm:$0xff] (%p739_p12)  ;;  %v748_v43 = vld [vmem:[#allocation2 + $0x50] sm:$0xff] (%p739_p12)  ;;  %v749_v44 = vld [vmem:[#allocation2 + $0x68] sm:$0xff] (%p739_p12) }
 0x236   : > { %v761_v35 = vand.u32 (%p739_p12), 127, %v760_v33  ;;  %v750_v47 = vld [vmem:[#allocation2 + $0x8] sm:$0xff] (%p739_p12)  ;;  %v752_v51 = vld [vmem:[#allocation2 + $0x40] sm:$0xff] (%p739_p12)  ;;  %v754_v55 = vld [vmem:[#allocation2 + $0x10] sm:$0xff] (%p739_p12) }
 0x237   : > { %v751_v48 = vld [vmem:[#allocation2 + $0x48] sm:$0xff] (%p739_p12)  ;;  %v753_v52 = vld [vmem:[#allocation2 + $0x20] sm:$0xff] (%p739_p12)  ;;  %v755_v56 = vld [vmem:[#allocation2 + $0x38] sm:$0xff] (%p739_p12) }
 0x238   : > { %vm762_vm0 = vcmp.lt.s32.totalorder (%p739_p12), %v761_v35, 8  ;;  %v756_v59 = vld [vmem:[#allocation2 + $0x60] sm:$0xff] (%p739_p12)  ;;  %v758_v63 = vld [vmem:[#allocation2 + $0x78] sm:$0xff] (%p739_p12)  ;;  %v759_v0 = vld [vmem:[#allocation2 + $0x28] sm:$0xff] (%p739_p12) }
 0x239   : > { %v763_v39 = vsel (%p739_p12), %vm762_vm0, %v744_v34, -1e+30  ;;  %v765_v40 = vsel (%p739_p12), %vm762_vm0, %v746_v36, -1e+30  ;;  %v764_v41 = vsel (%p739_p12), %vm762_vm0, %v745_v37, -1e+30 }
 0x23a   : > { %779 = vmax.xlane.f32.xlu0 %v763_v39  ;;  %783 = vmax.xlane.f32.xlu1 %v765_v40  ;;  %v766_v42 = vsel %vm762_vm0, %v747_v38, -1e+30  ;;  %v767_v45 = vsel %vm762_vm0, %v748_v43, -1e+30  ;;  %v768_v46 = vsel %vm762_vm0, %v749_v44, -1e+30 }
 0x23b   : > { %v769_v49 = vsel %vm762_vm0, %v750_v47, -1e+30  ;;  %v770_v50 = vsel %vm762_vm0, %v751_v48, -1e+30  ;;  %v771_v53 = vsel %vm762_vm0, %v752_v51, -1e+30 }
 0x23c   : > { %v772_v54 = vsel %vm762_vm0, %v753_v52, -1e+30  ;;  %v1448_v57 = vsel %vm762_vm0, %v754_v55, -1e+30  ;;  %v1451_v58 = vsel %vm762_vm0, %v755_v56, -1e+30 }
 0x23d   : > { %v757_v60 = vld [vmem:[#allocation2 + $0x70] sm:$0xff]  ;;  %v1456_v61 = vsel %vm762_vm0, %v756_v59, -1e+30  ;;  %v1464_v1 = vsel %vm762_vm0, %v758_v63, -1e+30 }
 0x23e   : > { %781 = vmax.xlane.f32.xlu0 %v764_v41  ;;  %785 = vmax.xlane.f32.xlu1 %v766_v42  ;;  %v1459_v62 = vsel %vm762_vm0, %v757_v60, -1e+30  ;;  %v1467_v2 = vsel %vm762_vm0, %v759_v0, -1e+30 }
 0x242   : > { %787 = vmax.xlane.f32.xlu0 %v767_v45  ;;  %789 = vmax.xlane.f32.xlu1 %v768_v46 }
 0x246   : > { %791 = vmax.xlane.f32.xlu0 %v769_v49  ;;  %793 = vmax.xlane.f32.xlu1 %v770_v50 }
 0x24a   : > { %795 = vmax.xlane.f32.xlu0 %v771_v53  ;;  %797 = vmax.xlane.f32.xlu1 %v772_v54 }
 0x24e   : > { %799 = vmax.xlane.f32.xlu0 %v1448_v57  ;;  %801 = vmax.xlane.f32.xlu1 %v1451_v58 }
 0x252   : > { %803 = vmax.xlane.f32.xlu0 %v1456_v61  ;;  %805 = vmax.xlane.f32.xlu1 %v1459_v62 }
 0x256   : > { %807 = vmax.xlane.f32.xlu0 %v1464_v1  ;;  %809 = vmax.xlane.f32.xlu1 %v1467_v2 }
 0x2c3   : > { %v780_v3 = vpop.xlane.xlu0 %779  ;;  %v784_v4 = vpop.xlane.xlu1 %783 }
 0x2c4   : > { %v811_v5 = vsub.f32 %v763_v39, %v780_v3  ;;  %v813_v6 = vsub.f32 %v765_v40, %v784_v4 }
 0x2c6   : > { %v827_v7 = vmul.f32 1.442695, %v811_v5  ;;  %v831_v8 = vmul.f32 1.442695, %v813_v6 }
 0x2c7   : > { %v782_v9 = vpop.xlane.xlu0 %781  ;;  %v786_v10 = vpop.xlane.xlu1 %785 }
 0x2c8   : > { %1230 = vpow2.f32 %v827_v7  ;;  %v812_v11 = vsub.f32 %v764_v41, %v782_v9  ;;  %v814_v12 = vsub.f32 %v766_v42, %v786_v10 }
 0x2c9   : > { %1232 = vpow2.f32 %v831_v8 }
 0x2ca   : > { %v829_v13 = vmul.f32 1.442695, %v812_v11  ;;  %v833_v14 = vmul.f32 1.442695, %v814_v12 }
 0x2cb   : > { %v788_v15 = vpop.xlane.xlu0 %787  ;;  %v790_v16 = vpop.xlane.xlu1 %789 }
 0x2cc   : > { %1234 = vpow2.f32 %v829_v13  ;;  %v815_v17 = vsub.f32 %v767_v45, %v788_v15  ;;  %v816_v18 = vsub.f32 %v768_v46, %v790_v16 }
 0x2cd   : > { %1236 = vpow2.f32 %v833_v14 }
 0x2ce   : > { %v835_v19 = vmul.f32 1.442695, %v815_v17  ;;  %v837_v20 = vmul.f32 1.442695, %v816_v18 }
 0x2cf   : > { %v792_v21 = vpop.xlane.xlu0 %791  ;;  %v794_v22 = vpop.xlane.xlu1 %793 }
 0x2d0   : > { %1238 = vpow2.f32 %v835_v19  ;;  %v817_v23 = vsub.f32 %v769_v49, %v792_v21  ;;  %v818_v24 = vsub.f32 %v770_v50, %v794_v22 }
 0x2d1   : > { %1240 = vpow2.f32 %v837_v20 }
 0x2d2   : > { %v839_v25 = vmul.f32 1.442695, %v817_v23  ;;  %v841_v26 = vmul.f32 1.442695, %v818_v24 }
 0x2d3   : > { %v796_v27 = vpop.xlane.xlu0 %795  ;;  %v798_v28 = vpop.xlane.xlu1 %797 }
 0x2d4   : > { %1242 = vpow2.f32 %v839_v25  ;;  %v819_v29 = vsub.f32 %v771_v53, %v796_v27  ;;  %v820_v30 = vsub.f32 %v772_v54, %v798_v28 }
 0x2d5   : > { %v1471_v31 = vpop.eup %1230  ;;  %1244 = vpow2.f32 %v841_v26 }
 0x2d6   : > { %v843_v32 = vmul.f32 1.442695, %v819_v29  ;;  %859 = vadd.xlane.f32.xlu0 %v1471_v31  ;;  %v845_v33 = vmul.f32 1.442695, %v820_v30  ;;  %v1474_v34 = vpop.eup %1232 }
 0x2d7   : > { %v800_v35 = vpop.xlane.xlu0 %799  ;;  %v802_v36 = vpop.xlane.xlu1 %801 }
 0x2d8   : > { %1246 = vpow2.f32 %v843_v32  ;;  %v821_v37 = vsub.f32 %v1448_v57, %v800_v35  ;;  %v822_v38 = vsub.f32 %v1451_v58, %v802_v36 }
 0x2d9   : > { %v1478_v39 = vpop.eup %1234  ;;  %1248 = vpow2.f32 %v845_v33 }
 0x2da   : > { %v847_v40 = vmul.f32 1.442695, %v821_v37  ;;  %863 = vadd.xlane.f32.xlu0 %v1474_v34  ;;  %861 = vadd.xlane.f32.xlu1 %v1478_v39  ;;  %v849_v41 = vmul.f32 1.442695, %v822_v38  ;;  %v1482_v42 = vpop.eup %1236 }
 0x2db   : > { %v804_v43 = vpop.xlane.xlu0 %803  ;;  %v806_v44 = vpop.xlane.xlu1 %805 }
 0x2dc   : > { %1250 = vpow2.f32 %v847_v40  ;;  %v823_v45 = vsub.f32 %v1456_v61, %v804_v43  ;;  %v824_v46 = vsub.f32 %v1459_v62, %v806_v44 }
 0x2dd   : > { %v1486_v47 = vpop.eup %1238  ;;  %1252 = vpow2.f32 %v849_v41 }
 0x2de   : > { %v851_v48 = vmul.f32 1.442695, %v823_v45  ;;  %865 = vadd.xlane.f32.xlu1 %v1482_v42  ;;  %867 = vadd.xlane.f32.xlu0 %v1486_v47  ;;  %v853_v49 = vmul.f32 1.442695, %v824_v46  ;;  %v1490_v50 = vpop.eup %1240 }
 0x2df   : > { %v808_v51 = vpop.xlane.xlu0 %807  ;;  %v810_v52 = vpop.xlane.xlu1 %809 }
 0x2e0   : > { %1254 = vpow2.f32 %v851_v48  ;;  %v825_v53 = vsub.f32 %v1464_v1, %v808_v51  ;;  %v826_v54 = vsub.f32 %v1467_v2, %v810_v52 }
 0x2e1   : > { %v1494_v55 = vpop.eup %1242  ;;  %1256 = vpow2.f32 %v853_v49 }
 0x2e2   : > { %v855_v56 = vmul.f32 1.442695, %v825_v53  ;;  %869 = vadd.xlane.f32.xlu1 %v1490_v50  ;;  %871 = vadd.xlane.f32.xlu0 %v1494_v55  ;;  %v857_v57 = vmul.f32 1.442695, %v826_v54  ;;  %v1498_v58 = vpop.eup %1244 }
 0x2e4   : > { %1258 = vpow2.f32 %v855_v56 }
 0x2e5   : > { %v1500_v59 = vpop.eup %1246  ;;  %1260 = vpow2.f32 %v857_v57 }
 0x2e6   : > { %873 = vadd.xlane.f32.xlu1 %v1498_v58  ;;  %875 = vadd.xlane.f32.xlu0 %v1500_v59  ;;  %v1504_v60 = vpop.eup %1248 }
 0x2e9   : > { %v1506_v61 = vpop.eup %1250 }
 0x2ea   : > { %877 = vadd.xlane.f32.xlu1 %v1504_v60  ;;  %879 = vadd.xlane.f32.xlu0 %v1506_v61  ;;  %v1510_v62 = vpop.eup %1252 }
 0x2ed   : > { %v1512_v63 = vpop.eup %1254 }
 0x2ee   : > { %881 = vadd.xlane.f32.xlu1 %v1510_v62  ;;  %883 = vadd.xlane.f32.xlu0 %v1512_v63  ;;  %v1516_v0 = vpop.eup %1256 }
 0x2f1   : > { %v1518_v1 = vpop.eup %1258 }
 0x2f2   : > { %885 = vadd.xlane.f32.xlu1 %v1516_v0  ;;  %887 = vadd.xlane.f32.xlu0 %v1518_v1  ;;  %v1522_v2 = vpop.eup %1260 }
 0x2f6   : > { %889 = vadd.xlane.f32.xlu1 %v1522_v2 }
 0x35f   : > { %v860_v3 = vpop.xlane.xlu0 %859 }
 0x360   : > { %1262 = vrcp.f32 %v860_v3 }
 0x363   : > { %v862_v4 = vpop.xlane.xlu1 %861  ;;  %v864_v5 = vpop.xlane.xlu0 %863 }
 0x364   : > { %1264 = vrcp.f32 %v862_v4 }
 0x365   : > { %1266 = vrcp.f32 %v864_v5 }
 0x367   : > { %v866_v6 = vpop.xlane.xlu1 %865  ;;  %v868_v7 = vpop.xlane.xlu0 %867 }
 0x368   : > { %1268 = vrcp.f32 %v866_v6 }
 0x369   : > { %1270 = vrcp.f32 %v868_v7 }
 0x36b   : > { %v870_v8 = vpop.xlane.xlu1 %869  ;;  %v872_v9 = vpop.xlane.xlu0 %871 }
 0x36c   : > { %1272 = vrcp.f32 %v870_v8 }
 0x36d   : > { %v1263_v10 = vpop.eup %1262  ;;  %1274 = vrcp.f32 %v872_v9 }
 0x36e   : > { %v907_v11 = vmul.f32 %v1263_v10, %v1471_v31 }
 0x36f   : > { %v874_v12 = vpop.xlane.xlu1 %873  ;;  %v876_v13 = vpop.xlane.xlu0 %875 }
 0x370   : > { %923 = vst [vmem:[%s1602_s4] sm:$0xff] %v907_v11  ;;  %1276 = vrcp.f32 %v874_v12 }
 0x371   : > { %v1265_v14 = vpop.eup %1264  ;;  %1278 = vrcp.f32 %v876_v13 }
 0x372   : > { %v1267_v15 = vpop.eup %1266  ;;  %v908_v16 = vmul.f32 %v1265_v14, %v1478_v39 }
 0x373   : > { %v909_v17 = vmul.f32 %v1267_v15, %v1474_v34  ;;  %v878_v18 = vpop.xlane.xlu1 %877  ;;  %v880_v19 = vpop.xlane.xlu0 %879 }
 0x374   : > { %924 = vst [vmem:[%s1602_s4 + $0x8] sm:$0xff] %v908_v16  ;;  %1280 = vrcp.f32 %v878_v18 }
 0x375   : > { %v1269_v20 = vpop.eup %1268  ;;  %925 = vst [vmem:[%s1602_s4 + $0x10] sm:$0xff] %v909_v17  ;;  %1282 = vrcp.f32 %v880_v19 }
 0x376   : > { %v1271_v21 = vpop.eup %1270  ;;  %v910_v22 = vmul.f32 %v1269_v20, %v1482_v42 }
 0x377   : > { %v911_v23 = vmul.f32 %v1271_v21, %v1486_v47  ;;  %v882_v24 = vpop.xlane.xlu1 %881  ;;  %v884_v25 = vpop.xlane.xlu0 %883 }
 0x378   : > { %926 = vst [vmem:[%s1602_s4 + $0x18] sm:$0xff] %v910_v22  ;;  %1284 = vrcp.f32 %v882_v24 }
 0x379   : > { %v1273_v26 = vpop.eup %1272  ;;  %927 = vst [vmem:[%s1602_s4 + $0x20] sm:$0xff] %v911_v23  ;;  %1286 = vrcp.f32 %v884_v25 }
 0x37a   : > { %v1275_v27 = vpop.eup %1274  ;;  %v912_v28 = vmul.f32 %v1273_v26, %v1490_v50 }
 0x37b   : > { %v913_v29 = vmul.f32 %v1275_v27, %v1494_v55  ;;  %v886_v30 = vpop.xlane.xlu1 %885  ;;  %v888_v31 = vpop.xlane.xlu0 %887 }
 0x37c   : > { %928 = vst [vmem:[%s1602_s4 + $0x28] sm:$0xff] %v912_v28  ;;  %1288 = vrcp.f32 %v886_v30 }
 0x37d   : > { %v1277_v32 = vpop.eup %1276  ;;  %929 = vst [vmem:[%s1602_s4 + $0x30] sm:$0xff] %v913_v29  ;;  %1290 = vrcp.f32 %v888_v31 }
 0x37e   : > { %v1279_v33 = vpop.eup %1278  ;;  %v914_v34 = vmul.f32 %v1277_v32, %v1498_v58 }
 0x37f   : > { %v915_v35 = vmul.f32 %v1279_v33, %v1500_v59  ;;  %v890_v36 = vpop.xlane.xlu1 %889 }
 0x380   : > { %930 = vst [vmem:[%s1602_s4 + $0x38] sm:$0xff] %v914_v34  ;;  %1292 = vrcp.f32 %v890_v36 }
 0x381   : > { %v1281_v37 = vpop.eup %1280  ;;  %931 = vst [vmem:[%s1602_s4 + $0x40] sm:$0xff] %v915_v35 }
 0x382   : > { %v1283_v38 = vpop.eup %1282  ;;  %v916_v39 = vmul.f32 %v1281_v37, %v1504_v60 }
 0x383   : > { %v917_v40 = vmul.f32 %v1283_v38, %v1506_v61 }
 0x384   : > { %932 = vst [vmem:[%s1602_s4 + $0x48] sm:$0xff] %v916_v39 }
 0x385   : > { %v1285_v41 = vpop.eup %1284  ;;  %933 = vst [vmem:[%s1602_s4 + $0x50] sm:$0xff] %v917_v40 }
 0x386   : > { %v1287_v42 = vpop.eup %1286  ;;  %v918_v43 = vmul.f32 %v1285_v41, %v1510_v62 }
 0x387   : > { %v919_v44 = vmul.f32 %v1287_v42, %v1512_v63 }
 0x388   : > { %934 = vst [vmem:[%s1602_s4 + $0x58] sm:$0xff] %v918_v43 }
 0x389   : > { %v1289_v45 = vpop.eup %1288  ;;  %935 = vst [vmem:[%s1602_s4 + $0x60] sm:$0xff] %v919_v44 }
 0x38a   : > { %v1291_v46 = vpop.eup %1290  ;;  %v920_v47 = vmul.f32 %v1289_v45, %v1516_v0 }
 0x38b   : > { %v921_v48 = vmul.f32 %v1291_v46, %v1518_v1 }
 0x38c   : > { %936 = vst [vmem:[%s1602_s4 + $0x68] sm:$0xff] %v920_v47 }
 0x38d   : > { %v1293_v49 = vpop.eup %1292  ;;  %937 = vst [vmem:[%s1602_s4 + $0x70] sm:$0xff] %v921_v48 }
 0x38e   : > { %v922_v50 = vmul.f32 %v1293_v49, %v1522_v2 }
 0x390   : > { %938 = vst [vmem:[%s1602_s4 + $0x78] sm:$0xff] %v922_v50 }
 0x391 PF: > { %s20_s22 = sadd.s32 1, %s1330_s22   ;;  %s1603_s20 = smov %s1326_s21 }
 0x392   : > { %p17_p13 = scmp.ge.s32.totalorder %s20_s22, 6   ;;  %s1604_s21 = smov %s1606_s0 }
 0x394   :  { %19 = sbr.rel (!%p17_p13) target bundleno = 17 (0x11), region = 80 }

</bundles_post_ra>
